<compile_context>
chip_gen: v6e
topology: v6e:2x2x1
jax: 0.10.0
libtpu: 0.0.40
codegen_flags: <defaults>
</compile_context>

<pallas_src>
import functools

import jax
import jax.numpy as jnp
from jax.experimental import pallas as pl
from jax.experimental.pallas import tpu as pltpu

W_BIT = 4
WEIGHT_GROUP = 16
IN_FEATURES = 64       # K
OUT_FEATURES = 32      # N


def _wlinear_kernel(x_ref, qw_ref, scale_ref, zero_ref, bias_ref, out_ref,
                    w_ref, *, group):
    """Grid = (n_tiles, m_tiles). w_ref: (tn, K) bf16 VMEM scratch (dequantized
    weight for the current N tile), persistent across the inner M sweep."""

    # ---- dequantize once per N tile (first M step only) ----
    @pl.when(pl.program_id(1) == 0)
    def _dequant():
        q = qw_ref[...].astype(jnp.int32)                  # (tn, K//2)
        low = (q & 0xF).astype(jnp.float32)                # logical cols [0, K/2)
        high = ((q >> 4) & 0xF).astype(jnp.float32)        # logical cols [K/2, K)
        scale = scale_ref[...].astype(jnp.float32)         # (tn, G)
        zero = zero_ref[...].astype(jnp.float32)           # (tn, G)
        kh = low.shape[1]
        gph = kh // group                                  # groups per nibble half
        n_groups = scale.shape[1]
        # Per-group slice dequant -> slice store (lane-aligned, no concat /
        # one-hot matmul).  Static Python loop; G is small.  For very large G
        # the factored form sum_g s_g*(x_g @ q_g^T) - (s*z)_g*sum_k x_g is
        # preferable, but at these sizes this runs once and is negligible.
        for gi in range(n_groups):
            half, idx = (low, gi) if gi < gph else (high, gi - gph)
            codes = half[:, idx * group:(idx + 1) * group]        # (tn, group)
            s = scale[:, gi:gi + 1]                               # (tn, 1)
            z = zero[:, gi:gi + 1]                                # (tn, 1)
            w_ref[:, gi * group:(gi + 1) * group] = (
                (codes - z) * s).astype(w_ref.dtype)

    # ---- steady state: bf16 GEMM on the MXU, f32 accumulation ----
    x = x_ref[...].astype(jnp.bfloat16)                    # (tm, K)
    acc = jax.lax.dot_general(
        x, w_ref[...], (((1,), (1,)), ((), ())),
        preferred_element_type=jnp.float32)                # (tm, tn)
    out_ref[...] = (acc + bias_ref[...].astype(jnp.float32)).astype(out_ref.dtype)


def wlinear_forward(x, qweight, weight_scale, weight_zero, bias=None,
                    *, weight_group=WEIGHT_GROUP, tm=None, tn=128):
    """Pallas WLinear forward. x: (..., in_features) -> (..., out_features)."""
    orig_shape = x.shape
    k = orig_shape[-1]
    n = qweight.shape[0]
    g = k // weight_group
    assert k % weight_group == 0
    assert (k // 2) % weight_group == 0, "groups must not straddle nibble halves"

    if bias is None:
        bias = jnp.zeros((n,), dtype=weight_scale.dtype)

    x2 = x.reshape(-1, k)
    m = x2.shape[0]

    # --- M tiling: big tiles, pad remainder rows with zeros ---
    if tm is None:
        tm = m if m <= 512 else 512
    m_pad = -(-m // tm) * tm
    if m_pad != m:
        x2 = jnp.pad(x2, ((0, m_pad - m), (0, 0)))

    # --- pad N (out_features) to a lane-dense multiple of tn (>=128) for
    #     unmasked output stores; padded rows dequantize to 0 weight / 0 bias ---
    n_pad = -(-n // tn) * tn
    qw_p, sc_p, zp_p, b_p = qweight, weight_scale, weight_zero, bias
    if n_pad != n:
        qw_p = jnp.pad(qw_p, ((0, n_pad - n), (0, 0)))
        sc_p = jnp.pad(sc_p, ((0, n_pad - n), (0, 0)))
        zp_p = jnp.pad(zp_p, ((0, n_pad - n), (0, 0)))
        b_p = jnp.pad(b_p, ((0, n_pad - n),))
    bias2 = b_p.reshape(1, n_pad)

    grid = (n_pad // tn, m_pad // tm)   # N outer (parallel), M inner (arbitrary)

    out = pl.pallas_call(
        functools.partial(_wlinear_kernel, group=weight_group),
        out_shape=jax.ShapeDtypeStruct((m_pad, n_pad), x.dtype),
        grid_spec=pltpu.PrefetchScalarGridSpec(
            num_scalar_prefetch=0,
            grid=grid,
            in_specs=[
                pl.BlockSpec((tm, k), lambda ni, mi: (mi, 0)),        # x tile
                pl.BlockSpec((tn, k // 2), lambda ni, mi: (ni, 0)),   # packed qweight
                pl.BlockSpec((tn, g), lambda ni, mi: (ni, 0)),        # weight_scale
                pl.BlockSpec((tn, g), lambda ni, mi: (ni, 0)),        # weight_zero
                pl.BlockSpec((1, tn), lambda ni, mi: (0, ni)),        # bias
            ],
            out_specs=pl.BlockSpec((tm, tn), lambda ni, mi: (mi, ni)),
            scratch_shapes=[pltpu.VMEM((tn, k), jnp.bfloat16)],       # dequant weight
        ),
        compiler_params=pltpu.CompilerParams(
            # N axis may be sharded (megacore); M axis must stay sequential so
            # the once-per-N-tile dequantized scratch is valid for every M step.
            dimension_semantics=("parallel", "arbitrary")),
    )(x2, qw_p, sc_p, zp_p, bias2)

    out = out[:m, :n]
    return out.reshape(*orig_shape[:-1], n)


def wlinear_reference(x, qweight, weight_scale, weight_zero, bias,
                      *, weight_group=WEIGHT_GROUP):
    """Pure-JAX reference mirroring WLinear.gemm_forward_cuda (half-precision
    weights / activations, f32 accumulation)."""
    q = qweight.astype(jnp.int32)
    low = q & 0xF
    high = (q >> 4) & 0xF
    w_q = jnp.concatenate([low, high], axis=-1).astype(jnp.float32)   # (N, K)
    n, k = w_q.shape
    g = k // weight_group
    w = (w_q.reshape(n, g, weight_group)
         - weight_zero.astype(jnp.float32)[:, :, None]) \
        * weight_scale.astype(jnp.float32)[:, :, None]
    w = w.reshape(n, k).astype(jnp.bfloat16)
    xb = x.reshape(-1, k).astype(jnp.bfloat16)
    out = jax.lax.dot_general(xb, w, (((1,), (1,)), ((), ())),
                              preferred_element_type=jnp.float32)
    out = out + bias.astype(jnp.float32)[None, :]
    return out.reshape(*x.shape[:-1], n)


if __name__ == "__main__":
    K, N, G = IN_FEATURES, OUT_FEATURES, IN_FEATURES // WEIGHT_GROUP
    key = jax.random.PRNGKey(0)
    k0, k1, k2, k3, k4 = jax.random.split(key, 5)

    # deterministic synthetic quantized parameters
    q_codes = jax.random.randint(k0, (N, K), 0, 2 ** W_BIT, dtype=jnp.int32)
    qweight = (q_codes[:, : K // 2] | (q_codes[:, K // 2:] << 4)).astype(jnp.uint8)
    weight_scale = (jax.random.uniform(k1, (N, G), jnp.float32) * 0.05
                    + 0.01).astype(jnp.bfloat16)
    weight_zero = jax.random.randint(k2, (N, G), 0, 2 ** W_BIT,
                                     dtype=jnp.int32).astype(jnp.int8)
    bias = (jax.random.normal(k3, (N,), jnp.float32) * 0.1).astype(jnp.bfloat16)

    # input consistent with a linear layer: (batch=2, seq=256, hidden=64)
    x = jax.random.normal(k4, (2, 256, K), jnp.float32)

    out = wlinear_forward(x, qweight, weight_scale, weight_zero, bias, tm=256)
    out = jax.block_until_ready(out)

    ref = wlinear_reference(x, qweight, weight_scale, weight_zero, bias)
    assert out.shape == (2, 256, N)
    err = jnp.max(jnp.abs(out - ref))
    assert jnp.allclose(out, ref, atol=2e-2, rtol=2e-2), f"max err {err}"

    print("KERNEL_OK")
</pallas_src>

<mosaic_0001>
module attributes {stable_mosaic.version = 11 : i64} {
  func.func @_wlinear_kernel(%arg0: i32, %arg1: i32, %arg2: memref<256x64xf32, #tpu.memory_space<vmem>>, %arg3: memref<128x32xi8, #tpu.memory_space<vmem>>, %arg4: memref<128x4xbf16, #tpu.memory_space<vmem>>, %arg5: memref<128x4xi8, #tpu.memory_space<vmem>>, %arg6: memref<1x128xbf16, #tpu.memory_space<vmem>>, %arg7: memref<256x128xf32, #tpu.memory_space<vmem>>, %arg8: memref<128x64xbf16, #tpu.memory_space<vmem>>) attributes {dimension_semantics = [#tpu.dimension_semantics<parallel>, #tpu.dimension_semantics<arbitrary>], iteration_bounds = array<i64: 1, 2>, scalar_prefetch = 0 : i64, scratch_operands = 1 : i64, tpu.core_type = #tpu.core_type<tc>, window_params = [{transform_indices = @transform_0, window_bounds = array<i64: 256, 64>}, {transform_indices = @transform_1, window_bounds = array<i64: 128, 32>}, {transform_indices = @transform_2, window_bounds = array<i64: 128, 4>}, {transform_indices = @transform_3, window_bounds = array<i64: 128, 4>}, {transform_indices = @transform_4, window_bounds = array<i64: 1, 128>}, {transform_indices = @transform_5, window_bounds = array<i64: 256, 128>}]} {
    %c0_i32 = arith.constant 0 : i32
    %0 = arith.cmpi eq, %arg1, %c0_i32 : i32
    %1 = arith.extui %0 : i1 to i32
    %c0_i32_0 = arith.constant 0 : i32
    %2 = arith.cmpi ne, %1, %c0_i32_0 : i32
    scf.if %2 {
      %c0_8 = arith.constant 0 : index
      %c0_9 = arith.constant 0 : index
      %12 = vector.load %arg3[%c0_8, %c0_9] : memref<128x32xi8, #tpu.memory_space<vmem>>, vector<128x32xi8>
      %13 = arith.extui %12 : vector<128x32xi8> to vector<128x32xi32>
      %c15_i32 = arith.constant 15 : i32
      %14 = vector.broadcast %c15_i32 : i32 to vector<128x32xi32>
      %15 = arith.andi %13, %14 : vector<128x32xi32>
      %16 = arith.sitofp %15 : vector<128x32xi32> to vector<128x32xf32>
      %c4_i32 = arith.constant 4 : i32
      %17 = vector.broadcast %c4_i32 : i32 to vector<128x32xi32>
      %18 = arith.shrsi %13, %17 : vector<128x32xi32>
      %c15_i32_10 = arith.constant 15 : i32
      %19 = vector.broadcast %c15_i32_10 : i32 to vector<128x32xi32>
      %20 = arith.andi %18, %19 : vector<128x32xi32>
      %21 = arith.sitofp %20 : vector<128x32xi32> to vector<128x32xf32>
      %c0_11 = arith.constant 0 : index
      %c0_12 = arith.constant 0 : index
      %22 = vector.load %arg4[%c0_11, %c0_12] : memref<128x4xbf16, #tpu.memory_space<vmem>>, vector<128x4xbf16>
      %23 = arith.extf %22 : vector<128x4xbf16> to vector<128x4xf32>
      %c0_13 = arith.constant 0 : index
      %c0_14 = arith.constant 0 : index
      %24 = vector.load %arg5[%c0_13, %c0_14] : memref<128x4xi8, #tpu.memory_space<vmem>>, vector<128x4xi8>
      %25 = arith.sitofp %24 : vector<128x4xi8> to vector<128x4xf32>
      %26 = vector.extract_strided_slice %16 {offsets = [0, 0], sizes = [128, 16], strides = [1, 1]} : vector<128x32xf32> to vector<128x16xf32>
      %27 = vector.extract_strided_slice %23 {offsets = [0, 0], sizes = [128, 1], strides = [1, 1]} : vector<128x4xf32> to vector<128x1xf32>
      %28 = vector.extract_strided_slice %25 {offsets = [0, 0], sizes = [128, 1], strides = [1, 1]} : vector<128x4xf32> to vector<128x1xf32>
      %29 = vector.broadcast %28 : vector<128x1xf32> to vector<128x16xf32>
      %30 = arith.subf %26, %29 : vector<128x16xf32>
      %31 = vector.broadcast %27 : vector<128x1xf32> to vector<128x16xf32>
      %32 = arith.mulf %30, %31 : vector<128x16xf32>
      %33 = arith.truncf %32 : vector<128x16xf32> to vector<128x16xbf16>
      %c0_15 = arith.constant 0 : index
      %c0_16 = arith.constant 0 : index
      %34 = vector.load %arg8[%c0_15, %c0_16] : memref<128x64xbf16, #tpu.memory_space<vmem>>, vector<128x16xbf16>
      tpu.vector_store %arg8[%c0_15, %c0_16], %33 {strides = array<i32>} : memref<128x64xbf16, #tpu.memory_space<vmem>>, vector<128x16xbf16>,
      %35 = vector.extract_strided_slice %16 {offsets = [0, 16], sizes = [128, 16], strides = [1, 1]} : vector<128x32xf32> to vector<128x16xf32>
      %36 = vector.extract_strided_slice %23 {offsets = [0, 1], sizes = [128, 1], strides = [1, 1]} : vector<128x4xf32> to vector<128x1xf32>
      %37 = vector.extract_strided_slice %25 {offsets = [0, 1], sizes = [128, 1], strides = [1, 1]} : vector<128x4xf32> to vector<128x1xf32>
      %38 = vector.broadcast %37 : vector<128x1xf32> to vector<128x16xf32>
      %39 = arith.subf %35, %38 : vector<128x16xf32>
      %40 = vector.broadcast %36 : vector<128x1xf32> to vector<128x16xf32>
      %41 = arith.mulf %39, %40 : vector<128x16xf32>
      %42 = arith.truncf %41 : vector<128x16xf32> to vector<128x16xbf16>
      %c0_17 = arith.constant 0 : index
      %c16 = arith.constant 16 : index
      %43 = vector.load %arg8[%c0_17, %c16] : memref<128x64xbf16, #tpu.memory_space<vmem>>, vector<128x16xbf16>
      tpu.vector_store %arg8[%c0_17, %c16], %42 {strides = array<i32>} : memref<128x64xbf16, #tpu.memory_space<vmem>>, vector<128x16xbf16>,
      %44 = vector.extract_strided_slice %21 {offsets = [0, 0], sizes = [128, 16], strides = [1, 1]} : vector<128x32xf32> to vector<128x16xf32>
      %45 = vector.extract_strided_slice %23 {offsets = [0, 2], sizes = [128, 1], strides = [1, 1]} : vector<128x4xf32> to vector<128x1xf32>
      %46 = vector.extract_strided_slice %25 {offsets = [0, 2], sizes = [128, 1], strides = [1, 1]} : vector<128x4xf32> to vector<128x1xf32>
      %47 = vector.broadcast %46 : vector<128x1xf32> to vector<128x16xf32>
      %48 = arith.subf %44, %47 : vector<128x16xf32>
      %49 = vector.broadcast %45 : vector<128x1xf32> to vector<128x16xf32>
      %50 = arith.mulf %48, %49 : vector<128x16xf32>
      %51 = arith.truncf %50 : vector<128x16xf32> to vector<128x16xbf16>
      %c0_18 = arith.constant 0 : index
      %c32 = arith.constant 32 : index
      %52 = vector.load %arg8[%c0_18, %c32] : memref<128x64xbf16, #tpu.memory_space<vmem>>, vector<128x16xbf16>
      tpu.vector_store %arg8[%c0_18, %c32], %51 {strides = array<i32>} : memref<128x64xbf16, #tpu.memory_space<vmem>>, vector<128x16xbf16>,
      %53 = vector.extract_strided_slice %21 {offsets = [0, 16], sizes = [128, 16], strides = [1, 1]} : vector<128x32xf32> to vector<128x16xf32>
      %54 = vector.extract_strided_slice %23 {offsets = [0, 3], sizes = [128, 1], strides = [1, 1]} : vector<128x4xf32> to vector<128x1xf32>
      %55 = vector.extract_strided_slice %25 {offsets = [0, 3], sizes = [128, 1], strides = [1, 1]} : vector<128x4xf32> to vector<128x1xf32>
      %56 = vector.broadcast %55 : vector<128x1xf32> to vector<128x16xf32>
      %57 = arith.subf %53, %56 : vector<128x16xf32>
      %58 = vector.broadcast %54 : vector<128x1xf32> to vector<128x16xf32>
      %59 = arith.mulf %57, %58 : vector<128x16xf32>
      %60 = arith.truncf %59 : vector<128x16xf32> to vector<128x16xbf16>
      %c0_19 = arith.constant 0 : index
      %c48 = arith.constant 48 : index
      %61 = vector.load %arg8[%c0_19, %c48] : memref<128x64xbf16, #tpu.memory_space<vmem>>, vector<128x16xbf16>
      tpu.vector_store %arg8[%c0_19, %c48], %60 {strides = array<i32>} : memref<128x64xbf16, #tpu.memory_space<vmem>>, vector<128x16xbf16>,
    } else {
    }
    %c0 = arith.constant 0 : index
    %c0_1 = arith.constant 0 : index
    %3 = vector.load %arg2[%c0, %c0_1] : memref<256x64xf32, #tpu.memory_space<vmem>>, vector<256x64xf32>
    %4 = arith.truncf %3 : vector<256x64xf32> to vector<256x64xbf16>
    %c0_2 = arith.constant 0 : index
    %c0_3 = arith.constant 0 : index
    %5 = vector.load %arg8[%c0_2, %c0_3] : memref<128x64xbf16, #tpu.memory_space<vmem>>, vector<128x64xbf16>
    %cst = arith.constant dense<0.000000e+00> : vector<256x128xf32>
    %6 = tpu.matmul %4, %5, %cst {dimension_numbers = #tpu.dot_dimension_numbers<[1], [1], [0], [0], [0, 0, 1, 0], [], []>} : vector<256x64xbf16>, vector<128x64xbf16>, vector<256x128xf32> -> vector<256x128xf32>
    %c0_4 = arith.constant 0 : index
    %c0_5 = arith.constant 0 : index
    %7 = vector.load %arg6[%c0_4, %c0_5] : memref<1x128xbf16, #tpu.memory_space<vmem>>, vector<1x128xbf16>
    %8 = arith.extf %7 : vector<1x128xbf16> to vector<1x128xf32>
    %9 = vector.broadcast %8 : vector<1x128xf32> to vector<256x128xf32>
    %10 = arith.addf %6, %9 : vector<256x128xf32>
    %c0_6 = arith.constant 0 : index
    %c0_7 = arith.constant 0 : index
    %11 = vector.load %arg7[%c0_6, %c0_7] : memref<256x128xf32, #tpu.memory_space<vmem>>, vector<256x128xf32>
    tpu.vector_store %arg7[%c0_6, %c0_7], %10 {strides = array<i32>} : memref<256x128xf32, #tpu.memory_space<vmem>>, vector<256x128xf32>,
    return
  }
  func.func @transform_0(%arg0: i32, %arg1: i32) -> (i32, i32) {
    %c0_i32 = arith.constant 0 : i32
    %c0_i32_0 = arith.constant 0 : i32
    return %arg1, %c0_i32 : i32, i32
  }
  func.func @transform_1(%arg0: i32, %arg1: i32) -> (i32, i32) {
    %c0_i32 = arith.constant 0 : i32
    %c0_i32_0 = arith.constant 0 : i32
    return %arg0, %c0_i32 : i32, i32
  }
  func.func @transform_2(%arg0: i32, %arg1: i32) -> (i32, i32) {
    %c0_i32 = arith.constant 0 : i32
    %c0_i32_0 = arith.constant 0 : i32
    return %arg0, %c0_i32 : i32, i32
  }
  func.func @transform_3(%arg0: i32, %arg1: i32) -> (i32, i32) {
    %c0_i32 = arith.constant 0 : i32
    %c0_i32_0 = arith.constant 0 : i32
    return %arg0, %c0_i32 : i32, i32
  }
  func.func @transform_4(%arg0: i32, %arg1: i32) -> (i32, i32) {
    %c0_i32 = arith.constant 0 : i32
    %c0_i32_0 = arith.constant 0 : i32
    return %c0_i32, %arg0 : i32, i32
  }
  func.func @transform_5(%arg0: i32, %arg1: i32) -> (i32, i32) {
    %c0_i32 = arith.constant 0 : i32
    return %arg1, %arg0 : i32, i32
  }
}

</mosaic_0001>

<bundles_post_ra>
// kernel: tpu_custom_call.1
= control target key start
LH: loop header
LB: loop body
LE: loop exit
PB: predicated region body
PF: predicated region fallthrough
CT: control target
= control target key end

     0   :  { %10 = vsyncpa [#allocation4], 0  ;;  %s3702_s0 = inlined_call_operand.vmem [shape: f32[512,64], index: 0, kind: input, shape index: {}]   ;;  %s3703_s1 = inlined_call_operand.vmem [shape: u8[128,32], index: 1, kind: input, shape index: {}]   ;;  %s3704_s2 = inlined_call_operand.vmem [shape: bf16[128,4], index: 2, kind: input, shape index: {}]   ;;  %s3705_s3 = inlined_call_operand.vmem [shape: s8[128,4], index: 3, kind: input, shape index: {}]   ;;  %s3706_s4 = inlined_call_operand.vmem [shape: bf16[1,128], index: 4, kind: input, shape index: {}]   ;;  %s3707_s5 = inlined_call_operand.hbm [shape: f32[512,128], index: 5, kind: output, shape index: {}]  }
   0x1   :  { %12 = vsyncpa [#allocation4 + $0x1], 0  ;;  %s2808_s18 = smov 0   ;;  %s2810_s19 = smov 0  }
   0x2   :  { %s2812_s20 = smov 0   ;;  %s2814_s21 = smov 0  }
   0x3   :  { %s2816_s22 = smov 0   ;;  %s2818_s23 = smov 0  }
   0x4 LB: > { %s2101_s24 = sadd.s32 4294967295, %s2768_s23   ;;  %s2102_s25 = sadd.s32 4294967294, %s2768_s23   ;;  %s2768_s23 = sphi %s2818_s23, %s18_s23   ;;  %s2764_s22 = sphi %s2816_s22, %s3792_s22   ;;  %s2760_s21 = sphi %s2814_s21, %s3791_s21   ;;  %s2756_s20 = sphi %s2812_s20, %s3790_s20   ;;  %s2752_s19 = sphi %s2810_s19, %s3789_s19   ;;  %s2748_s18 = sphi %s2808_s18, %s3788_s18  }
   0x5   : > { %s27_s26 = sadd.s32 1, %s2764_s22  ;;  %s169_s27 = sadd.s32 1, %s2756_s20 }
   0x6   : > { %p28_p0 = scmp.ge.s32.totalorder %s27_s26, 2  ;;  %p179_p1 = scmp.ne.s32.totalorder %s2756_s20, %s2752_s19 }
   0x7   : > { %p180_p2 = scmp.eq.s32.totalorder %s2101_s24, 1  ;;  %p185_p3 = scmp.ne.s32.totalorder %s2752_s19, %s2748_s18 }
   0x8   : > { %s3794_s26 = smov (%p28_p0, %s27_s26), 0  ;;  %p186_p5 = scmp.eq.s32.totalorder %s2102_s25, 1 }
   0x9   : > { %p2848_p4 = por %p180_p2, %p179_p1  ;;  %s164_s29 = ssub.s32 %s2764_s22, %s3794_s26 }
   0xa   : > { %p2109_p6 = scmp.ge.s32.totalorder %s2768_s23, 1  ;;  %p167_p7 = scmp.eq.s32.totalorder %s164_s29, 0 }
   0xb   : > { %p2855_p8 = por %p186_p5, %p185_p3  ;;  %p246_p9 = scmp.lt.s32.totalorder %s2768_s23, 3 }
   0xc   : > { %s2861_s6 = scalar_select %p167_p7, %s2756_s20, %s169_s27  }
   0xd   : > { %p247_p10 = pnand %p2109_p6, %p246_p9 }
   0xe   : > { %s289_s7 = sand.u32 (!%p247_p10), 1, %s2752_s19   ;;  %s2111_s8 = sshll.u32 (!%p247_p10), %s2760_s21, 5 }
   0xf   : > { %250 = sbr.rel (%p247_p10) target bundleno = 938 (0x3aa), region = 40  ;;  %s2110_s9 = sshll.u32 (!%p247_p10), %s289_s7, 8 }
  0x10   : > { %p293_p11 = scmp.lt.s32.totalorder (!%p247_p10), %s2111_s8, 63  ;;  %s2872_s14 = scalar_lea.vmem (!%p247_p10), [#allocation3], %s2110_s9 }
  0x11   : > { %p2113_p12 = scmp.ne.s32.totalorder (!%p247_p10), %s2760_s21, 0 }
  0x14   : > { %s3796_s8 = smov (!%p293_p11, %s2111_s8), 63  ;;  %324 = sbr.rel (%p2113_p12) target bundleno = 628 (0x274), region = 44 }
  0x15   : > { %s2112_s10 = sshll.u32 %s3796_s8, 3 }
  0x16   : > { %s2870_s13 = scalar_lea.vmem %s3702_s0, %s2112_s10 }
  0x19   : > { %v2431_v0 = vld [vmem:[%s3705_s3 + $0x4] sm:$0xff]   ;;  %v2312_v1 = vld [vmem:[%s3705_s3] ss:$28 sps:$4 sm:$0xff]   ;;  %v2770_v2 = vmov 0   ;;  %v2433_v13 = vld [vmem:[%s3705_s3 + $0xc] sm:$0xff]   ;;  %vm777_vm0 = vcmask 125952  }
  0x1a   : > { %2517 = vset.pattern.permute.xlu1 %v2770_v2  ;;  %2516 = vset.pattern.permute.xlu0 %v2770_v2  ;;  %v2317_v3 = vunpack.c.0.s8 %v2431_v0  ;;  %v2313_v4 = vunpack.c.0.s8 %v2312_v1  ;;  %v2318_v5 = vunpack.c.1.s8 %v2431_v0  ;;  %v2314_v6 = vunpack.c.1.s8 %v2312_v1  ;;  %v2435_v22 = vld [vmem:[%s3705_s3 + $0x14] sm:$0xff]   ;;  %v2304_v35 = vld [vmem:[%s3704_s2 + $0x8] sm:$0xff]   ;;  %v2273_v36 = vld [vmem:[%s3704_s2] sm:$0xff]   ;;  %s2774_s9 = smov 32  }
  0x1b   : > { %v2322_v11 = vunpack.c.3.s8 %v2431_v0  ;;  %v2321_v12 = vunpack.c.2.s8 %v2431_v0  ;;  %v2326_v16 = vunpack.c.1.s8 %v2433_v13  ;;  %v2325_v17 = vunpack.c.0.s8 %v2433_v13  ;;  %v2306_v43 = vld [vmem:[%s3704_s2 + $0x18] sm:$0xff]   ;;  %v2305_v44 = vld [vmem:[%s3704_s2 + $0x10] sm:$0xff]   ;;  %v2308_v51 = vld [vmem:[%s3704_s2 + $0x28] sm:$0xff]  }
  0x1c   : > { %v2881_v7 = vcvt.s32.f32 %v2317_v3  ;;  %v2883_v8 = vcvt.s32.f32 %v2313_v4  ;;  %v2887_v9 = vcvt.s32.f32 %v2318_v5  ;;  %v2889_v10 = vcvt.s32.f32 %v2314_v6  ;;  %v2307_v52 = vld [vmem:[%s3704_s2 + $0x20] sm:$0xff]   ;;  %v2310_v59 = vld [vmem:[%s3704_s2 + $0x38] sm:$0xff]   ;;  %v2309_v60 = vld [vmem:[%s3704_s2 + $0x30] sm:$0xff]  }
  0x1d   : > { %v2896_v14 = vcvt.s32.f32 %v2322_v11  ;;  %v2898_v15 = vcvt.s32.f32 %v2321_v12  ;;  %v2902_v18 = vcvt.s32.f32 %v2326_v16  ;;  %v2904_v19 = vcvt.s32.f32 %v2325_v17 }
  0x1e   : > { %3736 = vst [vmem:[#allocation6_spill] sm:$0xff] %v2881_v7  ;;  %3737 = vst [vmem:[#allocation7_spill] sm:$0xff] %v2883_v8  ;;  %533 = vperm.xlu1 %2517, %v2881_v7   ;;  %523 = vperm.xlu0 %2516, %v2883_v8   ;;  %v2330_v20 = vunpack.c.3.s8 %v2433_v13  ;;  %v2329_v21 = vunpack.c.2.s8 %v2433_v13  ;;  %v2334_v25 = vunpack.c.1.s8 %v2435_v22  ;;  %v2333_v26 = vunpack.c.0.s8 %v2435_v22 }
  0x1f   : > { %3738 = vst [vmem:[#allocation8_spill] sm:$0xff] %v2887_v9  ;;  %3739 = vst [vmem:[#allocation9_spill] sm:$0xff] %v2889_v10  ;;  %v2338_v29 = vunpack.c.3.s8 %v2435_v22  ;;  %v2337_v30 = vunpack.c.2.s8 %v2435_v22  ;;  %v2342_v31 = vunpack.c.3.s8 %v2312_v1  ;;  %v2341_v32 = vunpack.c.2.s8 %v2312_v1 }
  0x20   : > { %3740 = vst [vmem:[#allocation10_spill] sm:$0xff] %v2896_v14  ;;  %3741 = vst [vmem:[#allocation11_spill] sm:$0xff] %v2898_v15  ;;  %v2911_v23 = vcvt.s32.f32 %v2330_v20  ;;  %v2913_v24 = vcvt.s32.f32 %v2329_v21  ;;  %v2917_v27 = vcvt.s32.f32 %v2334_v25  ;;  %v2919_v28 = vcvt.s32.f32 %v2333_v26  ;;  %v325_v25 = vld [vmem:[%s3703_s1] sm:$0xff]  ;;  %v326_v26 = vld [vmem:[%s3703_s1 + $0x8] sm:$0xff] }
  0x21   : > { %3742 = vst [vmem:[#allocation12_spill] sm:$0xff] %v2902_v18  ;;  %3743 = vst [vmem:[#allocation13_spill] sm:$0xff] %v2904_v19  ;;  %v2923_v33 = vcvt.s32.f32 %v2338_v29  ;;  %v2925_v34 = vcvt.s32.f32 %v2337_v30  ;;  %v2933_v37 = vcvt.s32.f32 %v2342_v31  ;;  %v2935_v38 = vcvt.s32.f32 %v2341_v32  ;;  %v327_v29 = vld [vmem:[%s3703_s1 + $0x10] sm:$0xff] }
  0x22   : > { %538 = vperm.xlu1 %2517, %v2887_v9   ;;  %528 = vperm.xlu0 %2516, %v2889_v10   ;;  %3744 = vst [vmem:[#allocation14_spill] sm:$0xff] %v2911_v23  ;;  %3745 = vst [vmem:[#allocation15_spill] sm:$0xff] %v2913_v24  ;;  %v2278_v39 = vunpack.c.l.bf16 %v2304_v35  ;;  %v2279_v40 = vunpack.c.h.bf16 %v2304_v35  ;;  %v2274_v41 = vunpack.c.l.bf16 %v2273_v36  ;;  %v2275_v42 = vunpack.c.h.bf16 %v2273_v36 }
  0x23   : > { %3746 = vst [vmem:[#allocation16_spill] sm:$0xff] %v2917_v27  ;;  %3747 = vst [vmem:[#allocation17_spill] sm:$0xff] %v2919_v28  ;;  %v2286_v45 = vunpack.c.l.bf16 %v2306_v43  ;;  %v2287_v46 = vunpack.c.h.bf16 %v2306_v43  ;;  %v2282_v49 = vunpack.c.l.bf16 %v2305_v44  ;;  %v2283_v50 = vunpack.c.h.bf16 %v2305_v44 }
  0x24   : > { %3748 = vst [vmem:[#allocation18_spill] sm:$0xff] %v2923_v33  ;;  %3749 = vst [vmem:[#allocation19_spill] sm:$0xff] %v2925_v34  ;;  %v2947_v47 = vpack.i.bf16 %v2279_v40, %v2278_v39  ;;  %v2949_v48 = vpack.i.bf16 %v2275_v42, %v2274_v41  ;;  %v2294_v53 = vunpack.c.l.bf16 %v2308_v51  ;;  %v2295_v54 = vunpack.c.h.bf16 %v2308_v51  ;;  %v328_v40 = vld [vmem:[%s3703_s1 + $0x18] sm:$0xff] }
  0x25   : > { %3750 = vst [vmem:[#allocation20_spill] sm:$0xff] %v2933_v37  ;;  %3751 = vst [vmem:[#allocation21_spill] sm:$0xff] %v2935_v38  ;;  %v2959_v55 = vpack.i.bf16 %v2287_v46, %v2286_v45  ;;  %v2961_v56 = vpack.i.bf16 %v2283_v50, %v2282_v49  ;;  %v2290_v57 = vunpack.c.l.bf16 %v2307_v52  ;;  %v2291_v58 = vunpack.c.h.bf16 %v2307_v52 }
  0x26   : > { %548 = vperm.xlu1 %2517, %v2896_v14   ;;  %543 = vperm.xlu0 %2516, %v2898_v15   ;;  %3752 = vst [vmem:[#allocation22_spill] sm:$0xff] %v2947_v47  ;;  %3753 = vst [vmem:[#allocation23_spill] sm:$0xff] %v2949_v48  ;;  %v2969_v61 = vpack.i.bf16 %v2295_v54, %v2294_v53  ;;  %v2302_v62 = vunpack.c.l.bf16 %v2310_v59  ;;  %v2303_v0 = vunpack.c.h.bf16 %v2310_v59  ;;  %v2298_v1 = vunpack.c.l.bf16 %v2309_v60 }
  0x27   : > { %3754 = vst [vmem:[#allocation24_spill] sm:$0xff] %v2959_v55  ;;  %3755 = vst [vmem:[#allocation25_spill] sm:$0xff] %v2961_v56  ;;  %v2973_v63 = vpack.i.bf16 %v2291_v58, %v2290_v57  ;;  %v2299_v2 = vunpack.c.h.bf16 %v2309_v60  ;;  %v2771_v5 = vmov 1   ;;  %v2772_v6 = vmov 2  }
  0x28   : > { %3756 = vst [vmem:[#allocation26_spill] sm:$0xff] %v2969_v61  ;;  %v2977_v3 = vpack.i.bf16 %v2303_v0, %v2302_v62  ;;  %v331_v30 = vunpack.c.2.s8 %v325_v25  ;;  %v329_v31 = vunpack.c.0.s8 %v325_v25  ;;  %v332_v32 = vunpack.c.3.s8 %v325_v25 }
  0x29   : > { %3757 = vst [vmem:[#allocation27_spill] sm:$0xff] %v2973_v63  ;;  %v2979_v4 = vpack.i.bf16 %v2299_v2, %v2298_v1  ;;  %v330_v35 = vunpack.c.1.s8 %v325_v25  ;;  %v334_v41 = vunpack.c.1.s8 %v326_v26  ;;  %v333_v42 = vunpack.c.0.s8 %v326_v26 }
  0x2a   : > { %558 = vperm.xlu1 %2517, %v2902_v18   ;;  %553 = vperm.xlu0 %2516, %v2904_v19   ;;  %3758 = vst [vmem:[#allocation28_spill] sm:$0xff] %v2977_v3  ;;  %v336_v43 = vunpack.c.3.s8 %v326_v26  ;;  %v335_v44 = vunpack.c.2.s8 %v326_v26  ;;  %v338_v45 = vunpack.c.1.s8 %v327_v29  ;;  %v337_v46 = vunpack.c.0.s8 %v327_v29 }
  0x2b   : > { %3759 = vst [vmem:[#allocation29_spill] sm:$0xff] %v2979_v4  ;;  %v340_v49 = vunpack.c.3.s8 %v327_v29  ;;  %v339_v50 = vunpack.c.2.s8 %v327_v29  ;;  %v342_v51 = vunpack.c.1.s8 %v328_v40  ;;  %v341_v52 = vunpack.c.0.s8 %v328_v40 }
  0x2c   : > { %v3062_v53 = vand.u32 255, %v331_v30  ;;  %v3064_v54 = vand.u32 255, %v329_v31  ;;  %v3066_v57 = vand.u32 255, %v332_v32  ;;  %v3068_v58 = vand.u32 255, %v330_v35 }
  0x2d   : > { %v3074_v62 = vand.u32 255, %v334_v41  ;;  %v3076_v0 = vand.u32 255, %v333_v42  ;;  %v3078_v1 = vand.u32 255, %v336_v43  ;;  %v3080_v2 = vand.u32 255, %v335_v44 }
  0x2e   : > { %568 = vperm.xlu1 %2517, %v2911_v23   ;;  %563 = vperm.xlu0 %2516, %v2913_v24   ;;  %v344_v25 = vunpack.c.3.s8 %v328_v40  ;;  %v343_v26 = vunpack.c.2.s8 %v328_v40  ;;  %v3086_v29 = vand.u32 255, %v340_v49  ;;  %v3088_v30 = vand.u32 255, %v339_v50 }
  0x2f   : > { %v3091_v31 = vand.u32 255, %v342_v51  ;;  %v3093_v32 = vand.u32 255, %v341_v52  ;;  %v363_v35 = vand.u32 15, %v3062_v53  ;;  %v361_v41 = vand.u32 15, %v3064_v54 }
  0x30   : > { %v364_v42 = vand.u32 15, %v3066_v57  ;;  %v362_v43 = vand.u32 15, %v3068_v58  ;;  %v368_v49 = vand.u32 15, %v3078_v1  ;;  %v367_v50 = vand.u32 15, %v3080_v2 }
  0x31   : > { %vm1018_vm1 = vcmask 257152   ;;  %vm1291_vm2 = vcmask 388352   ;;  %vm1564_vm3 = vcmask 519552  }
  0x32   : > { %578 = vperm.xlu1 %2517, %v2917_v27   ;;  %573 = vperm.xlu0 %2516, %v2919_v28  }
  0x36   : > { %588 = vperm.xlu1 %2517, %v2923_v33   ;;  %583 = vperm.xlu0 %2516, %v2925_v34  }
  0x3a   : > { %598 = vperm.xlu1 %2517, %v2933_v37   ;;  %593 = vperm.xlu0 %2516, %v2935_v38  }
  0x3e   : > { %2524 = vperm.xlu1 %2517, %v2947_v47   ;;  %2519 = vperm.xlu0 %2516, %v2949_v48  }
  0x42   : > { %2534 = vperm.xlu1 %2517, %v2959_v55   ;;  %2529 = vperm.xlu0 %2516, %v2961_v56  }
  0x46   : > { %2544 = vperm.xlu1 %2517, %v2969_v61   ;;  %2539 = vperm.xlu0 %2516, %v2973_v63  }
  0x4a   : > { %2554 = vperm.xlu1 %2517, %v2977_v3   ;;  %2549 = vperm.xlu0 %2516, %v2979_v4  }
  0x4e   : > { %2559 = vset.pattern.permute.xlu1 %v2771_v5  ;;  %2558 = vset.pattern.permute.xlu0 %v2771_v5  ;;  %v3082_v5 = vand.u32 255, %v338_v45  ;;  %v366_v45 = vand.u32 15, %v3074_v62 }
  0x4f   : > { %799 = vperm.xlu1 %2559, %v2889_v10   ;;  %795 = vperm.xlu0 %2558, %v2883_v8  }
  0x50   : > { %v370_v51 = vand.u32 15, %v3082_v5 }
  0x53   : > { %803 = vperm.xlu1 %2559, %v2881_v7   ;;  %807 = vperm.xlu0 %2558, %v2887_v9  }
  0x57   : > { %811 = vperm.xlu1 %2559, %v2898_v15   ;;  %815 = vperm.xlu0 %2558, %v2896_v14  }
  0x5b   : > { %819 = vperm.xlu1 %2559, %v2904_v19   ;;  %823 = vperm.xlu0 %2558, %v2902_v18  }
  0x5f   : > { %827 = vperm.xlu1 %2559, %v2913_v24   ;;  %831 = vperm.xlu0 %2558, %v2911_v23  }
  0x63   : > { %835 = vperm.xlu1 %2559, %v2919_v28   ;;  %839 = vperm.xlu0 %2558, %v2917_v27  }
  0x67   : > { %843 = vperm.xlu1 %2559, %v2925_v34   ;;  %847 = vperm.xlu0 %2558, %v2923_v33  }
  0x6b   : > { %851 = vperm.xlu1 %2559, %v2935_v38   ;;  %855 = vperm.xlu0 %2558, %v2933_v37  }
  0x6f   : > { %2561 = vperm.xlu1 %2559, %v2949_v48   ;;  %2566 = vperm.xlu0 %2558, %v2947_v47  }
  0x73   : > { %2571 = vperm.xlu1 %2559, %v2961_v56   ;;  %2576 = vperm.xlu0 %2558, %v2959_v55  }
  0x77   : > { %2581 = vperm.xlu1 %2559, %v2973_v63   ;;  %2586 = vperm.xlu0 %2558, %v2969_v61  }
  0x7b   : > { %2591 = vperm.xlu1 %2559, %v2979_v4   ;;  %2596 = vperm.xlu0 %2558, %v2977_v3  }
  0x7f   : > { %2600 = vset.pattern.permute.xlu1 %v2772_v6  ;;  %2601 = vset.pattern.permute.xlu0 %v2772_v6  ;;  %v3084_v6 = vand.u32 255, %v337_v46  ;;  %v365_v46 = vand.u32 15, %v3076_v0 }
  0x80   : > { %1036 = vperm.xlu1 %2600, %v2883_v8   ;;  %1040 = vperm.xlu0 %2601, %v2889_v10  }
  0x81   : > { %v369_v52 = vand.u32 15, %v3084_v6 }
  0x84   : > { %1044 = vperm.xlu1 %2600, %v2881_v7   ;;  %1052 = vperm.xlu0 %2601, %v2898_v15  }
  0x88   : > { %1048 = vperm.xlu1 %2600, %v2887_v9   ;;  %1060 = vperm.xlu0 %2601, %v2904_v19  }
  0x8c   : > { %1056 = vperm.xlu1 %2600, %v2896_v14   ;;  %1068 = vperm.xlu0 %2601, %v2913_v24  }
  0x90   : > { %1064 = vperm.xlu1 %2600, %v2902_v18   ;;  %1076 = vperm.xlu0 %2601, %v2919_v28   ;;  %v3135_v28 = vcvt.s32.f32 %v367_v50 }
  0x94   : > { %1072 = vperm.xlu1 %2600, %v2911_v23   ;;  %1084 = vperm.xlu0 %2601, %v2925_v34   ;;  %v3131_v34 = vcvt.s32.f32 %v365_v46 }
  0x98   : > { %1080 = vperm.xlu1 %2600, %v2917_v27   ;;  %1092 = vperm.xlu0 %2601, %v2935_v38   ;;  %v3123_v38 = vcvt.s32.f32 %v362_v43  ;;  %v3133_v27 = vcvt.s32.f32 %v368_v49 }
  0x99   : > { %v3021_v11 = vpop.permute.xlu1 %533  ;;  %v3023_v12 = vpop.permute.xlu0 %523 }
  0x9c   : > { %1088 = vperm.xlu1 %2600, %v2923_v33   ;;  %2603 = vperm.xlu0 %2601, %v2949_v48   ;;  %v3119_v48 = vcvt.s32.f32 %v361_v41  ;;  %v3129_v33 = vcvt.s32.f32 %v366_v45  ;;  %v3139_v41 = vcvt.s32.f32 %v369_v52 }
  0x9d   : > { %v3027_v13 = vpop.permute.xlu1 %538  ;;  %v3029_v16 = vpop.permute.xlu0 %528 }
  0x9e   : > { %v601_v50 = vsub.f32 %v3119_v48, %v3023_v12  ;;  %v602_v52 = vsub.f32 %v3123_v38, %v3029_v16 }
  0xa0   : > { %1096 = vperm.xlu1 %2600, %v2933_v37   ;;  %2613 = vperm.xlu0 %2601, %v2961_v56   ;;  %v373_v56 = vand.u32 15, %v3093_v32  ;;  %v3121_v37 = vcvt.s32.f32 %v364_v42 }
  0xa1   : > { %v3033_v17 = vpop.permute.xlu1 %548  ;;  %v3035_v20 = vpop.permute.xlu0 %543 }
  0xa2   : > { %v3149_v46 = vcvt.s32.f32 %v373_v56  ;;  %v606_v56 = vsub.f32 %v3129_v33, %v3033_v17  ;;  %v605_v16 = vsub.f32 %v3131_v34, %v3035_v20 }
  0xa4   : > { %2608 = vperm.xlu1 %2600, %v2947_v47   ;;  %2623 = vperm.xlu0 %2601, %v2973_v63   ;;  %v371_v63 = vand.u32 15, %v3088_v30  ;;  %v3117_v47 = vcvt.s32.f32 %v363_v35  ;;  %v3137_v35 = vcvt.s32.f32 %v370_v51  ;;  %v604_v51 = vsub.f32 %v3121_v37, %v3027_v13 }
  0xa5   : > { %v3039_v21 = vpop.permute.xlu1 %558  ;;  %v3041_v22 = vpop.permute.xlu0 %553 }
  0xa6   : > { %v3145_v24 = vcvt.s32.f32 %v371_v63  ;;  %v603_v49 = vsub.f32 %v3117_v47, %v3021_v11 }
  0xa8   : > { %2618 = vperm.xlu1 %2600, %v2959_v55   ;;  %2633 = vperm.xlu0 %2601, %v2979_v4   ;;  %v3111_v4 = vand.u32 255, %v343_v26  ;;  %v374_v55 = vand.u32 15, %v3091_v31 }
  0xa9   : > { %v3054_v36 = vpop.permute.xlu1 %568  ;;  %v3056_v39 = vpop.permute.xlu0 %563 }
  0xaa   : > { %3761 = vst [vmem:[#allocation31_spill] sm:$0xff] %v3111_v4  ;;  %v375_v43 = vand.u32 15, %v3111_v4  ;;  %v3147_v45 = vcvt.s32.f32 %v374_v55  ;;  %v610_v17 = vsub.f32 %v3137_v35, %v3054_v36  ;;  %v609_v20 = vsub.f32 %v3139_v41, %v3056_v39 }
  0xac   : > { %2628 = vperm.xlu1 %2600, %v2969_v61   ;;  %v372_v61 = vand.u32 15, %v3086_v29  ;;  %v3163_v11 = vcvt.s32.f32 %v375_v43 }
  0xad   : > { %v3070_v59 = vpop.permute.xlu1 %578  ;;  %v3072_v60 = vpop.permute.xlu0 %573 }
  0xae   : > { %v3143_v23 = vcvt.s32.f32 %v372_v61 }
  0xb0   : > { %2638 = vperm.xlu1 %2600, %v2977_v3   ;;  %v3109_v3 = vand.u32 255, %v344_v25 }
  0xb1   : > { %v3099_v44 = vpop.permute.xlu1 %588  ;;  %v3101_v40 = vpop.permute.xlu0 %583 }
  0xb2   : > { %3760 = vst [vmem:[#allocation30_spill] sm:$0xff] %v3109_v3  ;;  %v376_v42 = vand.u32 15, %v3109_v3 }
  0xb4   : > { %v3161_v15 = vcvt.s32.f32 %v376_v42 }
  0xb5   : > { %v3125_v25 = vpop.permute.xlu1 %598  ;;  %v3127_v26 = vpop.permute.xlu0 %593 }
  0xb9   : > { %v2525_v61 = vpop.permute.xlu1 %2524  ;;  %v2520_v18 = vpop.permute.xlu0 %2519 }
  0xba   : > { %v2527_v63 = vunpack.i.h.bf16 %v2525_v61  ;;  %v2526_v19 = vunpack.i.l.bf16 %v2525_v61  ;;  %v2522_v55 = vunpack.i.h.bf16 %v2520_v18  ;;  %v2521_v14 = vunpack.i.l.bf16 %v2520_v18 }
  0xbb   : > { %v608_v61 = vsub.f32 %v3133_v27, %v3039_v21  ;;  %v607_v18 = vsub.f32 %v3135_v28, %v3041_v22  ;;  %v612_v21 = vsub.f32 %v3143_v23, %v3070_v59  ;;  %v611_v22 = vsub.f32 %v3145_v24, %v3072_v60 }
  0xbc   : > { %v699_v12 = vmul.f32 %v2526_v19, %v603_v49  ;;  %v700_v9 = vmul.f32 %v2527_v63, %v604_v51  ;;  %v697_v13 = vmul.f32 %v2521_v14, %v601_v50  ;;  %v698_v7 = vmul.f32 %v2522_v55, %v602_v52 }
  0xbd   : > { %v2535_v42 = vpop.permute.xlu1 %2534  ;;  %v2530_v43 = vpop.permute.xlu0 %2529 }
  0xbe   : > { %v2209_v8 = vpack.c.bf16 %v699_v12, %v699_v12  ;;  %v2210_v10 = vpack.c.bf16 %v700_v9, %v700_v9  ;;  %v2207_v19 = vpack.c.bf16 %v697_v13, %v697_v13  ;;  %v2208_v49 = vpack.c.bf16 %v698_v7, %v698_v7 }
  0xbf   : > { %v2537_v14 = vunpack.i.h.bf16 %v2535_v42  ;;  %v2536_v50 = vunpack.i.l.bf16 %v2535_v42  ;;  %v2532_v51 = vunpack.i.h.bf16 %v2530_v43  ;;  %v2531_v52 = vunpack.i.l.bf16 %v2530_v43 }
  0xc0   : > { %779 = vst.msk [vmem:[#allocation2 + $0x4] sm:$0xf] %vm777_vm0, %v2208_v49  ;;  %778 = vst.msk [vmem:[#allocation2] sm:$0xf] %vm777_vm0, %v2207_v19  ;;  %v2773_v12 = vmov 3  }
  0xc1   : > { %780 = vst.msk [vmem:[#allocation2 + $0x8] sm:$0xf] %vm777_vm0, %v2209_v8  ;;  %781 = vst.msk [vmem:[#allocation2 + $0xc] sm:$0xf] %vm777_vm0, %v2210_v10  ;;  %v703_v7 = vmul.f32 %v2536_v50, %v607_v18  ;;  %v704_v9 = vmul.f32 %v2537_v14, %v608_v61  ;;  %v701_v36 = vmul.f32 %v2531_v52, %v605_v16  ;;  %v2545_v55 = vpop.permute.xlu1 %2544  ;;  %v2540_v39 = vpop.permute.xlu0 %2539  ;;  %2643 = vset.pattern.permute.xlu1 %v2773_v12 }
  0xc2   : > { %v702_v63 = vmul.f32 %v2532_v51, %v606_v56  ;;  %v2547_v59 = vunpack.i.h.bf16 %v2545_v55  ;;  %v2546_v13 = vunpack.i.l.bf16 %v2545_v55  ;;  %v2542_v42 = vunpack.i.h.bf16 %v2540_v39  ;;  %2642 = vset.pattern.permute.xlu0 %v2773_v12 }
  0xc3   : > { %v2541_v60 = vunpack.i.l.bf16 %v2540_v39  ;;  %v2213_v43 = vpack.c.bf16 %v703_v7, %v703_v7  ;;  %v2214_v49 = vpack.c.bf16 %v704_v9, %v704_v9  ;;  %v2211_v19 = vpack.c.bf16 %v701_v36, %v701_v36 }
  0xc4   : > { %v2212_v3 = vpack.c.bf16 %v702_v63, %v702_v63  ;;  %v707_v8 = vmul.f32 %v2546_v13, %v611_v22  ;;  %v708_v4 = vmul.f32 %v2547_v59, %v612_v21  ;;  %v706_v18 = vmul.f32 %v2542_v42, %v610_v17 }
  0xc5   : > { %v705_v10 = vmul.f32 %v2541_v60, %v609_v20  ;;  %v614_v56 = vsub.f32 %v3147_v45, %v3099_v44  ;;  %v613_v16 = vsub.f32 %v3149_v46, %v3101_v40  ;;  %v616_v61 = vsub.f32 %v3161_v15, %v3125_v25  ;;  %v2555_v50 = vpop.permute.xlu1 %2554  ;;  %v2550_v51 = vpop.permute.xlu0 %2549  ;;  %782 = vst.msk [vmem:[#allocation2 + $0x10] sm:$0xf] %vm777_vm0, %v2211_v19 }
  0xc6   : > { %v615_v14 = vsub.f32 %v3163_v11, %v3127_v26  ;;  %783 = vst.msk [vmem:[#allocation2 + $0x14] sm:$0xf] %vm777_vm0, %v2212_v3  ;;  %784 = vst.msk [vmem:[#allocation2 + $0x18] sm:$0xf] %vm777_vm0, %v2213_v43  ;;  %v2217_v44 = vpack.c.bf16 %v707_v8, %v707_v8  ;;  %v2218_v17 = vpack.c.bf16 %v708_v4, %v708_v4  ;;  %v2557_v20 = vunpack.i.h.bf16 %v2555_v50 }
  0xc7   : > { %785 = vst.msk [vmem:[#allocation2 + $0x1c] sm:$0xf] %vm777_vm0, %v2214_v49  ;;  %v2215_v52 = vpack.c.bf16 %v705_v10, %v705_v10  ;;  %v2216_v40 = vpack.c.bf16 %v706_v18, %v706_v18  ;;  %v2556_v21 = vunpack.i.l.bf16 %v2555_v50  ;;  %v2552_v25 = vunpack.i.h.bf16 %v2550_v51 }
  0xc8   : > { %v2551_v22 = vunpack.i.l.bf16 %v2550_v51  ;;  %788 = vst.msk [vmem:[#allocation2 + $0x28] sm:$0xf] %vm777_vm0, %v2217_v44  ;;  %789 = vst.msk [vmem:[#allocation2 + $0x2c] sm:$0xf] %vm777_vm0, %v2218_v17  ;;  %v712_v26 = vmul.f32 %v2557_v20, %v616_v61 }
  0xc9   : > { %786 = vst.msk [vmem:[#allocation2 + $0x20] sm:$0xf] %vm777_vm0, %v2215_v52  ;;  %787 = vst.msk [vmem:[#allocation2 + $0x24] sm:$0xf] %vm777_vm0, %v2216_v40  ;;  %v711_v3 = vmul.f32 %v2556_v21, %v615_v14  ;;  %v710_v9 = vmul.f32 %v2552_v25, %v614_v56 }
  0xca   : > { %v709_v7 = vmul.f32 %v2551_v22, %v613_v16  ;;  %v800_v36 = vpop.permute.xlu1 %799  ;;  %v796_v4 = vpop.permute.xlu0 %795  ;;  %v2222_v55 = vpack.c.bf16 %v712_v26, %v712_v26 }
  0xcb   : > { %v2221_v63 = vpack.c.bf16 %v711_v3, %v711_v3  ;;  %v2220_v12 = vpack.c.bf16 %v710_v9, %v710_v9  ;;  %v859_v50 = vsub.f32 %v3123_v38, %v800_v36  ;;  %v858_v51 = vsub.f32 %v3119_v48, %v796_v4 }
  0xcc   : > { %v2219_v39 = vpack.c.bf16 %v709_v7, %v709_v7  ;;  %793 = vst.msk [vmem:[#allocation2 + $0x3c] sm:$0xf] %vm777_vm0, %v2222_v55 }
  0xcd   : > { %791 = vst.msk [vmem:[#allocation2 + $0x34] sm:$0xf] %vm777_vm0, %v2220_v12  ;;  %792 = vst.msk [vmem:[#allocation2 + $0x38] sm:$0xf] %vm777_vm0, %v2221_v63 }
  0xce   : > { %790 = vst.msk [vmem:[#allocation2 + $0x30] sm:$0xf] %vm777_vm0, %v2219_v39  ;;  %v804_v59 = vpop.permute.xlu1 %803  ;;  %v808_v13 = vpop.permute.xlu0 %807 }
  0xcf   : > { %v860_v44 = vsub.f32 %v3117_v47, %v804_v59  ;;  %v861_v17 = vsub.f32 %v3121_v37, %v808_v13 }
  0xd2   : > { %v812_v42 = vpop.permute.xlu1 %811  ;;  %v816_v60 = vpop.permute.xlu0 %815 }
  0xd3   : > { %v862_v63 = vsub.f32 %v3131_v34, %v812_v42  ;;  %v863_v38 = vsub.f32 %v3129_v33, %v816_v60 }
  0xd6   : > { %v820_v43 = vpop.permute.xlu1 %819  ;;  %v824_v49 = vpop.permute.xlu0 %823 }
  0xd7   : > { %v864_v48 = vsub.f32 %v3135_v28, %v820_v43  ;;  %v865_v47 = vsub.f32 %v3133_v27, %v824_v49 }
  0xda   : > { %v828_v19 = vpop.permute.xlu1 %827  ;;  %v832_v8 = vpop.permute.xlu0 %831 }
  0xdb   : > { %v867_v34 = vsub.f32 %v3137_v35, %v832_v8 }
  0xde   : > { %v836_v10 = vpop.permute.xlu1 %835  ;;  %v840_v18 = vpop.permute.xlu0 %839 }
  0xdf   : > { %v868_v33 = vsub.f32 %v3145_v24, %v836_v10  ;;  %v869_v28 = vsub.f32 %v3143_v23, %v840_v18 }
  0xe2   : > { %v3203_v56 = vpop.permute.xlu1 %843  ;;  %v3205_v16 = vpop.permute.xlu0 %847 }
  0xe6   : > { %v3207_v61 = vpop.permute.xlu1 %851  ;;  %v3209_v14 = vpop.permute.xlu0 %855 }
  0xea   : > { %v2562_v52 = vpop.permute.xlu1 %2561  ;;  %v2567_v40 = vpop.permute.xlu0 %2566 }
  0xeb   : > { %v2564_v20 = vunpack.i.h.bf16 %v2562_v52  ;;  %v2563_v21 = vunpack.i.l.bf16 %v2562_v52  ;;  %v2569_v25 = vunpack.i.h.bf16 %v2567_v40  ;;  %v2568_v22 = vunpack.i.l.bf16 %v2567_v40 }
  0xed   : > { %v938_v3 = vmul.f32 %v2563_v21, %v858_v51  ;;  %v939_v26 = vmul.f32 %v2564_v20, %v859_v50  ;;  %v940_v7 = vmul.f32 %v2568_v22, %v860_v44  ;;  %v941_v9 = vmul.f32 %v2569_v25, %v861_v17 }
  0xee   : > { %v2572_v37 = vpop.permute.xlu1 %2571  ;;  %v2577_v36 = vpop.permute.xlu0 %2576  ;;  %v866_v44 = vsub.f32 %v3139_v41, %v828_v19  ;;  %v870_v25 = vsub.f32 %v3149_v46, %v3203_v56  ;;  %v871_v22 = vsub.f32 %v3147_v45, %v3205_v16 }
  0xef   : > { %v2223_v4 = vpack.c.bf16 %v938_v3, %v938_v3  ;;  %v2224_v55 = vpack.c.bf16 %v939_v26, %v939_v26  ;;  %v2225_v39 = vpack.c.bf16 %v940_v7, %v940_v7  ;;  %v2226_v12 = vpack.c.bf16 %v941_v9, %v941_v9 }
  0xf0   : > { %v2574_v59 = vunpack.i.h.bf16 %v2572_v37  ;;  %v2573_v13 = vunpack.i.l.bf16 %v2572_v37  ;;  %v2579_v51 = vunpack.i.h.bf16 %v2577_v36  ;;  %v2578_v50 = vunpack.i.l.bf16 %v2577_v36 }
  0xf1   : > { %1020 = vst.msk [vmem:[#allocation2 + $0x4] sm:$0xf] %vm1018_vm1, %v2224_v55  ;;  %1019 = vst.msk [vmem:[#allocation2] sm:$0xf] %vm1018_vm1, %v2223_v4  ;;  %v872_v3 = vsub.f32 %v3163_v11, %v3207_v61  ;;  %v873_v26 = vsub.f32 %v3161_v15, %v3209_v14 }
  0xf2   : > { %1021 = vst.msk [vmem:[#allocation2 + $0x8] sm:$0xf] %vm1018_vm1, %v2225_v39  ;;  %1022 = vst.msk [vmem:[#allocation2 + $0xc] sm:$0xf] %vm1018_vm1, %v2226_v12  ;;  %v942_v27 = vmul.f32 %v2573_v13, %v862_v63  ;;  %v943_v42 = vmul.f32 %v2574_v59, %v863_v38  ;;  %v944_v60 = vmul.f32 %v2578_v50, %v864_v48  ;;  %v2582_v49 = vpop.permute.xlu1 %2581  ;;  %v2587_v41 = vpop.permute.xlu0 %2586 }
  0xf3   : > { %v945_v43 = vmul.f32 %v2579_v51, %v865_v47  ;;  %v2584_v19 = vunpack.i.h.bf16 %v2582_v49  ;;  %v2583_v35 = vunpack.i.l.bf16 %v2582_v49  ;;  %v2589_v8 = vunpack.i.h.bf16 %v2587_v41 }
  0xf4   : > { %v2588_v24 = vunpack.i.l.bf16 %v2587_v41  ;;  %v2227_v10 = vpack.c.bf16 %v942_v27, %v942_v27  ;;  %v2228_v23 = vpack.c.bf16 %v943_v42, %v943_v42  ;;  %v2229_v18 = vpack.c.bf16 %v944_v60, %v944_v60 }
  0xf5   : > { %v2230_v17 = vpack.c.bf16 %v945_v43, %v945_v43  ;;  %v946_v52 = vmul.f32 %v2583_v35, %v866_v44  ;;  %v947_v40 = vmul.f32 %v2584_v19, %v867_v34  ;;  %v949_v21 = vmul.f32 %v2589_v8, %v869_v28 }
  0xf6   : > { %v948_v20 = vmul.f32 %v2588_v24, %v868_v33  ;;  %v2592_v7 = vpop.permute.xlu1 %2591  ;;  %v2597_v9 = vpop.permute.xlu0 %2596  ;;  %1023 = vst.msk [vmem:[#allocation2 + $0x10] sm:$0xf] %vm1018_vm1, %v2227_v10  ;;  %1024 = vst.msk [vmem:[#allocation2 + $0x14] sm:$0xf] %vm1018_vm1, %v2228_v23  ;;  %v393_v27 = vshra.s32 %v3064_v54, 4  ;;  %v394_v42 = vshra.s32 %v3068_v58, 4 }
  0xf7   : > { %1025 = vst.msk [vmem:[#allocation2 + $0x18] sm:$0xf] %vm1018_vm1, %v2229_v18  ;;  %1026 = vst.msk [vmem:[#allocation2 + $0x1c] sm:$0xf] %vm1018_vm1, %v2230_v17  ;;  %v2231_v46 = vpack.c.bf16 %v946_v52, %v946_v52  ;;  %v2232_v56 = vpack.c.bf16 %v947_v40, %v947_v40  ;;  %v2234_v45 = vpack.c.bf16 %v949_v21, %v949_v21  ;;  %v2594_v16 = vunpack.i.h.bf16 %v2592_v7 }
  0xf8   : > { %v2233_v63 = vpack.c.bf16 %v948_v20, %v948_v20  ;;  %v2593_v38 = vunpack.i.l.bf16 %v2592_v7  ;;  %v2599_v11 = vunpack.i.h.bf16 %v2597_v9  ;;  %v2598_v61 = vunpack.i.l.bf16 %v2597_v9 }
  0xf9   : > { %1027 = vst.msk [vmem:[#allocation2 + $0x20] sm:$0xf] %vm1018_vm1, %v2231_v46  ;;  %1028 = vst.msk [vmem:[#allocation2 + $0x24] sm:$0xf] %vm1018_vm1, %v2232_v56  ;;  %v951_v14 = vmul.f32 %v2594_v16, %v871_v22  ;;  %v3261_v49 = vand.u32 15, %v393_v27  ;;  %v3263_v41 = vand.u32 15, %v394_v42 }
  0xfa   : > { %1029 = vst.msk [vmem:[#allocation2 + $0x28] sm:$0xf] %vm1018_vm1, %v2233_v63  ;;  %1030 = vst.msk [vmem:[#allocation2 + $0x2c] sm:$0xf] %vm1018_vm1, %v2234_v45  ;;  %v950_v15 = vmul.f32 %v2593_v38, %v870_v25  ;;  %v952_v48 = vmul.f32 %v2598_v61, %v872_v3  ;;  %v953_v47 = vmul.f32 %v2599_v11, %v873_v26  ;;  %v395_v19 = vshra.s32 %v3062_v53, 4 }
  0xfb   : > { %v1037_v37 = vpop.permute.xlu1 %1036  ;;  %v1041_v36 = vpop.permute.xlu0 %1040  ;;  %v2236_v55 = vpack.c.bf16 %v951_v14, %v951_v14  ;;  %v396_v35 = vshra.s32 %v3066_v57, 4  ;;  %v425_v54 = vcvt.s32.f32 %v3261_v49  ;;  %v426_v58 = vcvt.s32.f32 %v3263_v41 }
  0xfc   : > { %v2235_v4 = vpack.c.bf16 %v950_v15, %v950_v15  ;;  %v2237_v39 = vpack.c.bf16 %v952_v48, %v952_v48  ;;  %v2238_v12 = vpack.c.bf16 %v953_v47, %v953_v47  ;;  %v397_v10 = vshra.s32 %v3076_v0, 4 }
  0xfd   : > { %1032 = vst.msk [vmem:[#allocation2 + $0x34] sm:$0xf] %vm1018_vm1, %v2236_v55  ;;  %v398_v23 = vshra.s32 %v3074_v62, 4  ;;  %v3275_v18 = vand.u32 15, %v395_v19  ;;  %v3277_v17 = vand.u32 15, %v396_v35  ;;  %v1099_v57 = vsub.f32 %v425_v54, %v1037_v37 }
  0xfe   : > { %1031 = vst.msk [vmem:[#allocation2 + $0x30] sm:$0xf] %vm1018_vm1, %v2235_v4  ;;  %1033 = vst.msk [vmem:[#allocation2 + $0x38] sm:$0xf] %vm1018_vm1, %v2237_v39  ;;  %v1100_v40 = vsub.f32 %v426_v58, %v1041_v36  ;;  %v3285_v25 = vand.u32 15, %v397_v10  ;;  %v399_v7 = vshra.s32 %v3080_v2, 4 }
  0xff   : > { %1034 = vst.msk [vmem:[#allocation2 + $0x3c] sm:$0xf] %vm1018_vm1, %v2238_v12  ;;  %v1045_v59 = vpop.permute.xlu1 %1044  ;;  %v1053_v13 = vpop.permute.xlu0 %1052  ;;  %v3287_v0 = vand.u32 15, %v398_v23  ;;  %v427_v3 = vcvt.s32.f32 %v3275_v18  ;;  %v428_v26 = vcvt.s32.f32 %v3277_v17  ;;  %v400_v9 = vshra.s32 %v3078_v1, 4 }
 0x100   : > { %v401_v63 = vshra.s32 %v3084_v6, 4  ;;  %v402_v45 = vshra.s32 %v3082_v5, 4  ;;  %v429_v11 = vcvt.s32.f32 %v3285_v25  ;;  %v3304_v15 = vand.u32 15, %v399_v7 }
 0x101   : > { %v430_v61 = vcvt.s32.f32 %v3287_v0  ;;  %v1101_v2 = vsub.f32 %v427_v3, %v1045_v59  ;;  %v3306_v6 = vand.u32 15, %v400_v9  ;;  %v403_v42 = vshra.s32 %v3088_v30, 4 }
 0x102   : > { %v3309_v36 = vand.u32 15, %v401_v63  ;;  %v3311_v4 = vand.u32 15, %v402_v45  ;;  %v1103_v55 = vsub.f32 %v429_v11, %v1053_v13  ;;  %v404_v19 = vshra.s32 %v3086_v29, 4 }
 0x103   : > { %v1049_v51 = vpop.permute.xlu1 %1048  ;;  %v3247_v50 = vpop.permute.xlu0 %1060  ;;  %v432_v27 = vcvt.s32.f32 %v3306_v6  ;;  %v3331_v7 = vand.u32 15, %v403_v42 }
 0x104   : > { %v1102_v1 = vsub.f32 %v428_v26, %v1049_v51  ;;  %v431_v51 = vcvt.s32.f32 %v3304_v15  ;;  %v3333_v9 = vand.u32 15, %v404_v19 }
 0x106   : > { %v1105_v29 = vsub.f32 %v431_v51, %v3247_v50 }
 0x107   : > { %v1057_v44 = vpop.permute.xlu1 %1056  ;;  %v3249_v34 = vpop.permute.xlu0 %1068 }
 0x108   : > { %v1104_v39 = vsub.f32 %v430_v61, %v1057_v44  ;;  %v433_v44 = vcvt.s32.f32 %v3309_v36 }
 0x10a   : > { %v1107_v50 = vsub.f32 %v433_v44, %v3249_v34 }
 0x10b   : > { %v3251_v33 = vpop.permute.xlu1 %1064  ;;  %v3253_v28 = vpop.permute.xlu0 %1076 }
 0x10c   : > { %v1106_v30 = vsub.f32 %v432_v27, %v3251_v33 }
 0x10f   : > { %v3257_v60 = vpop.permute.xlu1 %1072  ;;  %v3259_v43 = vpop.permute.xlu0 %1084 }
 0x113   : > { %v3267_v8 = vpop.permute.xlu1 %1080  ;;  %v3269_v24 = vpop.permute.xlu0 %1092 }
 0x117   : > { %v3279_v52 = vpop.permute.xlu1 %1088  ;;  %v2604_v53 = vpop.permute.xlu0 %2603 }
 0x118   : > { %v2606_v20 = vunpack.i.h.bf16 %v2604_v53  ;;  %v2605_v21 = vunpack.i.l.bf16 %v2604_v53 }
 0x11a   : > { %v1179_v62 = vmul.f32 %v2605_v21, %v1099_v57  ;;  %v1180_v22 = vmul.f32 %v2606_v20, %v1100_v40  ;;  %v434_v21 = vcvt.s32.f32 %v3311_v4 }
 0x11b   : > { %v3293_v46 = vpop.permute.xlu1 %1096  ;;  %v2614_v16 = vpop.permute.xlu0 %2613 }
 0x11c   : > { %v2240_v56 = vpack.c.bf16 %v1180_v22, %v1180_v22  ;;  %v2239_v38 = vpack.c.bf16 %v1179_v62, %v1179_v62  ;;  %v2616_v14 = vunpack.i.h.bf16 %v2614_v16  ;;  %v2615_v48 = vunpack.i.l.bf16 %v2614_v16 }
 0x11d   : > { %v405_v62 = vshra.s32 %v3093_v32, 4  ;;  %v406_v22 = vshra.s32 %v3091_v31, 4  ;;  %v1108_v33 = vsub.f32 %v434_v21, %v3257_v60 }
 0x11e   : > { %1245 = vrot.lane.b32.xlu1 %v2240_v56, %s2774_s9  ;;  %1243 = vrot.lane.b32.xlu0 %v2239_v38, %s2774_s9  ;;  %v1183_v10 = vmul.f32 %v2615_v48, %v1103_v55  ;;  %v1184_v23 = vmul.f32 %v2616_v14, %v1104_v39  ;;  %v436_v14 = vcvt.s32.f32 %v3333_v9  ;;  %v3762_v48 = vld [vmem:[#allocation31_spill] sm:$0xff] }
 0x11f   : > { %v2609_v5 = vpop.permute.xlu1 %2608  ;;  %v2624_v53 = vpop.permute.xlu0 %2623  ;;  %v3343_v38 = vand.u32 15, %v405_v62 }
 0x120   : > { %v2611_v47 = vunpack.i.h.bf16 %v2609_v5  ;;  %v2610_v37 = vunpack.i.l.bf16 %v2609_v5  ;;  %v2626_v56 = vunpack.i.h.bf16 %v2624_v53  ;;  %v2625_v32 = vunpack.i.l.bf16 %v2624_v53 }
 0x121   : > { %v2244_v45 = vpack.c.bf16 %v1184_v23, %v1184_v23  ;;  %v2243_v16 = vpack.c.bf16 %v1183_v10, %v1183_v10  ;;  %v435_v5 = vcvt.s32.f32 %v3331_v7  ;;  %v1110_v53 = vsub.f32 %v436_v14, %v3267_v8 }
 0x122   : > { %v1181_v12 = vmul.f32 %v2610_v37, %v1101_v2  ;;  %v1182_v59 = vmul.f32 %v2611_v47, %v1102_v1  ;;  %v3345_v2 = vand.u32 15, %v406_v22  ;;  %v407_v47 = vshra.s32 %v3762_v48, 4  ;;  %v3763_v37 = vld [vmem:[#allocation30_spill] sm:$0xff] }
 0x123   : > { %v2619_v35 = vpop.permute.xlu1 %2618  ;;  %v408_v55 = vshra.s32 %v3763_v37, 4  ;;  %v1187_v34 = vmul.f32 %v2625_v32, %v1107_v50  ;;  %v1188_v39 = vmul.f32 %v2626_v56, %v1108_v33  ;;  %v2634_v60 = vpop.permute.xlu0 %2633  ;;  %v1109_v23 = vsub.f32 %v435_v5, %v3253_v28 }
 0x124   : > { %v2621_v57 = vunpack.i.h.bf16 %v2619_v35  ;;  %v2620_v40 = vunpack.i.l.bf16 %v2619_v35  ;;  %v2242_v13 = vpack.c.bf16 %v1182_v59, %v1182_v59  ;;  %v2241_v20 = vpack.c.bf16 %v1181_v12, %v1181_v12 }
 0x125   : > { %v437_v35 = vcvt.s32.f32 %v3343_v38  ;;  %v438_v10 = vcvt.s32.f32 %v3345_v2 }
 0x126   : > { %1249 = vrot.lane.b32.xlu1 %v2242_v13, %s2774_s9  ;;  %1247 = vrot.lane.b32.xlu0 %v2241_v20, %s2774_s9  ;;  %v1185_v63 = vmul.f32 %v2620_v40, %v1105_v29  ;;  %v1186_v31 = vmul.f32 %v2621_v57, %v1106_v30  ;;  %v3361_v57 = vand.u32 15, %v407_v47  ;;  %v3363_v40 = vand.u32 15, %v408_v55 }
 0x127   : > { %v2629_v1 = vpop.permute.xlu1 %2628  ;;  %v2636_v13 = vunpack.i.h.bf16 %v2634_v60  ;;  %v2635_v20 = vunpack.i.l.bf16 %v2634_v60  ;;  %v2248_v29 = vpack.c.bf16 %v1188_v39, %v1188_v39  ;;  %v2247_v30 = vpack.c.bf16 %v1187_v34, %v1187_v34  ;;  %v3766_v60 = vld [vmem:[#allocation6_spill] sm:$0xff] }
 0x128   : > { %v2631_v12 = vunpack.i.h.bf16 %v2629_v1  ;;  %v2630_v59 = vunpack.i.l.bf16 %v2629_v1  ;;  %v2246_v42 = vpack.c.bf16 %v1186_v31, %v1186_v31  ;;  %v2245_v19 = vpack.c.bf16 %v1185_v63, %v1185_v63 }
 0x129   : > { %v1111_v28 = vsub.f32 %v437_v35, %v3259_v43  ;;  %v1112_v8 = vsub.f32 %v438_v10, %v3279_v52  ;;  %v439_v32 = vcvt.s32.f32 %v3361_v57  ;;  %v440_v63 = vcvt.s32.f32 %v3363_v40 }
 0x12a   : > { %1253 = vrot.lane.b32.xlu1 %v2244_v45, %s2774_s9  ;;  %1251 = vrot.lane.b32.xlu0 %v2243_v16, %s2774_s9  ;;  %v1189_v62 = vmul.f32 %v2630_v59, %v1109_v23  ;;  %v1190_v22 = vmul.f32 %v2631_v12, %v1110_v53  ;;  %v3767_v12 = vld [vmem:[#allocation8_spill] sm:$0xff]  ;;  %v3768_v59 = vld [vmem:[#allocation11_spill] sm:$0xff] }
 0x12b   : > { %v2639_v56 = vpop.permute.xlu1 %2638  ;;  %v1191_v31 = vmul.f32 %v2635_v20, %v1111_v28  ;;  %v1192_v45 = vmul.f32 %v2636_v13, %v1112_v8  ;;  %v1113_v43 = vsub.f32 %v439_v32, %v3269_v24  ;;  %v1114_v52 = vsub.f32 %v440_v63, %v3293_v46  ;;  %v3764_v24 = vld [vmem:[#allocation9_spill] sm:$0xff]  ;;  %v3765_v46 = vld [vmem:[#allocation7_spill] sm:$0xff]  ;;  %v3771_v23 = vld [vmem:[#allocation12_spill] sm:$0xff] }
 0x12c   : > { %v2641_v16 = vunpack.i.h.bf16 %v2639_v56  ;;  %v2640_v50 = vunpack.i.l.bf16 %v2639_v56  ;;  %v2250_v33 = vpack.c.bf16 %v1190_v22, %v1190_v22  ;;  %v2249_v1 = vpack.c.bf16 %v1189_v62, %v1189_v62  ;;  %v3772_v53 = vld [vmem:[#allocation15_spill] sm:$0xff]  ;;  %v3773_v13 = vld [vmem:[#allocation14_spill] sm:$0xff]  ;;  %v3774_v20 = vld [vmem:[#allocation17_spill] sm:$0xff] }
 0x12d   : > { %v2252_v37 = vpack.c.bf16 %v1192_v45, %v1192_v45  ;;  %v2251_v55 = vpack.c.bf16 %v1191_v31, %v1191_v31  ;;  %v3775_v62 = vld [vmem:[#allocation16_spill] sm:$0xff]  ;;  %v3776_v22 = vld [vmem:[#allocation19_spill] sm:$0xff]  ;;  %v3781_v56 = vld [vmem:[#allocation22_spill] sm:$0xff] }
 0x12e   : > { %1257 = vrot.lane.b32.xlu1 %v2246_v42, %s2774_s9  ;;  %1255 = vrot.lane.b32.xlu0 %v2245_v19, %s2774_s9  ;;  %v1193_v48 = vmul.f32 %v2640_v50, %v1113_v43  ;;  %v1194_v47 = vmul.f32 %v2641_v16, %v1114_v52  ;;  %v3769_v42 = vld [vmem:[#allocation10_spill] sm:$0xff]  ;;  %v3770_v19 = vld [vmem:[#allocation13_spill] sm:$0xff]  ;;  %v3779_v28 = vld [vmem:[#allocation20_spill] sm:$0xff] }
 0x12f   : > { %v3780_v8 = vld [vmem:[#allocation23_spill] sm:$0xff]  ;;  %v3782_v31 = vld [vmem:[#allocation25_spill] sm:$0xff]  ;;  %v3783_v45 = vld [vmem:[#allocation24_spill] sm:$0xff] }
 0x130   : > { %v2254_v34 = vpack.c.bf16 %v1194_v47, %v1194_v47  ;;  %v2253_v39 = vpack.c.bf16 %v1193_v48, %v1193_v48  ;;  %v3784_v16 = vld [vmem:[#allocation27_spill] sm:$0xff]  ;;  %v3785_v50 = vld [vmem:[#allocation26_spill] sm:$0xff] }
 0x132   : > { %1261 = vrot.lane.b32.xlu1 %v2248_v29, %s2774_s9  ;;  %1259 = vrot.lane.b32.xlu0 %v2247_v30, %s2774_s9  ;;  %v3777_v29 = vld [vmem:[#allocation18_spill] sm:$0xff]  ;;  %v3778_v30 = vld [vmem:[#allocation21_spill] sm:$0xff] }
 0x136   : > { %1265 = vrot.lane.b32.xlu1 %v2250_v33, %s2774_s9  ;;  %1263 = vrot.lane.b32.xlu0 %v2249_v1, %s2774_s9  ;;  %v3786_v33 = vld [vmem:[#allocation29_spill] sm:$0xff]  ;;  %v3787_v1 = vld [vmem:[#allocation28_spill] sm:$0xff] }
 0x13a   : > { %1269 = vrot.lane.b32.xlu1 %v2252_v37, %s2774_s9  ;;  %1267 = vrot.lane.b32.xlu0 %v2251_v55, %s2774_s9 }
 0x13e   : > { %1273 = vrot.lane.b32.xlu1 %v2254_v34, %s2774_s9  ;;  %1271 = vrot.lane.b32.xlu0 %v2253_v39, %s2774_s9 }
 0x142   : > { %1313 = vperm.xlu1 %2643, %v3764_v24   ;;  %1309 = vperm.xlu0 %2642, %v3765_v46  }
 0x146   : > { %1317 = vperm.xlu1 %2643, %v3766_v60   ;;  %1321 = vperm.xlu0 %2642, %v3767_v12  }
 0x14a   : > { %1325 = vperm.xlu1 %2643, %v3768_v59   ;;  %1329 = vperm.xlu0 %2642, %v3769_v42  }
 0x14e   : > { %1333 = vperm.xlu1 %2643, %v3770_v19   ;;  %1337 = vperm.xlu0 %2642, %v3771_v23  }
 0x152   : > { %1341 = vperm.xlu1 %2643, %v3772_v53   ;;  %1345 = vperm.xlu0 %2642, %v3773_v13  }
 0x156   : > { %1349 = vperm.xlu1 %2643, %v3774_v20   ;;  %1353 = vperm.xlu0 %2642, %v3775_v62  }
 0x15a   : > { %1357 = vperm.xlu1 %2643, %v3776_v22   ;;  %1361 = vperm.xlu0 %2642, %v3777_v29  }
 0x15e   : > { %1365 = vperm.xlu1 %2643, %v3778_v30   ;;  %1369 = vperm.xlu0 %2642, %v3779_v28  }
 0x162   : > { %2645 = vperm.xlu1 %2643, %v3780_v8   ;;  %2650 = vperm.xlu0 %2642, %v3781_v56  }
 0x166   : > { %2655 = vperm.xlu1 %2643, %v3782_v31   ;;  %2660 = vperm.xlu0 %2642, %v3783_v45  }
 0x16a   : > { %2665 = vperm.xlu1 %2643, %v3784_v16   ;;  %2670 = vperm.xlu0 %2642, %v3785_v50  }
 0x16e   : > { %2675 = vperm.xlu1 %2643, %v3786_v33   ;;  %2680 = vperm.xlu0 %2642, %v3787_v1  }
 0x190   : > { %v1246_v43 = vpop.permute.xlu1 %1245  ;;  %v1244_v52 = vpop.permute.xlu0 %1243 }
 0x191   : > { %1293 = vst.msk [vmem:[#allocation2 + $0x4] sm:$0xf] %vm1291_vm2, %v1246_v43  ;;  %1292 = vst.msk [vmem:[#allocation2] sm:$0xf] %vm1291_vm2, %v1244_v52 }
 0x198   : > { %v1250_v48 = vpop.permute.xlu1 %1249  ;;  %v1248_v47 = vpop.permute.xlu0 %1247 }
 0x199   : > { %1295 = vst.msk [vmem:[#allocation2 + $0xc] sm:$0xf] %vm1291_vm2, %v1250_v48  ;;  %1294 = vst.msk [vmem:[#allocation2 + $0x8] sm:$0xf] %vm1291_vm2, %v1248_v47 }
 0x19c   : > { %v1254_v37 = vpop.permute.xlu1 %1253  ;;  %v1252_v55 = vpop.permute.xlu0 %1251 }
 0x19d   : > { %1297 = vst.msk [vmem:[#allocation2 + $0x14] sm:$0xf] %vm1291_vm2, %v1254_v37  ;;  %1296 = vst.msk [vmem:[#allocation2 + $0x10] sm:$0xf] %vm1291_vm2, %v1252_v55 }
 0x1a0   : > { %v1258_v34 = vpop.permute.xlu1 %1257  ;;  %v1256_v39 = vpop.permute.xlu0 %1255 }
 0x1a1   : > { %1299 = vst.msk [vmem:[#allocation2 + $0x1c] sm:$0xf] %vm1291_vm2, %v1258_v34  ;;  %1298 = vst.msk [vmem:[#allocation2 + $0x18] sm:$0xf] %vm1291_vm2, %v1256_v39 }
 0x1a4   : > { %v1262_v24 = vpop.permute.xlu1 %1261  ;;  %v1260_v46 = vpop.permute.xlu0 %1259 }
 0x1a5   : > { %1301 = vst.msk [vmem:[#allocation2 + $0x24] sm:$0xf] %vm1291_vm2, %v1262_v24  ;;  %1300 = vst.msk [vmem:[#allocation2 + $0x20] sm:$0xf] %vm1291_vm2, %v1260_v46 }
 0x1a8   : > { %v1266_v60 = vpop.permute.xlu1 %1265  ;;  %v1264_v12 = vpop.permute.xlu0 %1263 }
 0x1a9   : > { %1303 = vst.msk [vmem:[#allocation2 + $0x2c] sm:$0xf] %vm1291_vm2, %v1266_v60  ;;  %1302 = vst.msk [vmem:[#allocation2 + $0x28] sm:$0xf] %vm1291_vm2, %v1264_v12 }
 0x1ac   : > { %v1270_v59 = vpop.permute.xlu1 %1269  ;;  %v1268_v42 = vpop.permute.xlu0 %1267 }
 0x1ad   : > { %1305 = vst.msk [vmem:[#allocation2 + $0x34] sm:$0xf] %vm1291_vm2, %v1270_v59  ;;  %1304 = vst.msk [vmem:[#allocation2 + $0x30] sm:$0xf] %vm1291_vm2, %v1268_v42 }
 0x1b0   : > { %v1274_v19 = vpop.permute.xlu1 %1273  ;;  %v1272_v23 = vpop.permute.xlu0 %1271 }
 0x1b1   : > { %1307 = vst.msk [vmem:[#allocation2 + $0x3c] sm:$0xf] %vm1291_vm2, %v1274_v19  ;;  %1306 = vst.msk [vmem:[#allocation2 + $0x38] sm:$0xf] %vm1291_vm2, %v1272_v23 }
 0x1bd   : > { %v1314_v53 = vpop.permute.xlu1 %1313  ;;  %v1310_v13 = vpop.permute.xlu0 %1309 }
 0x1be   : > { %v1373_v43 = vsub.f32 %v426_v58, %v1314_v53  ;;  %v1372_v47 = vsub.f32 %v425_v54, %v1310_v13 }
 0x1c1   : > { %v1318_v20 = vpop.permute.xlu1 %1317  ;;  %v1322_v62 = vpop.permute.xlu0 %1321 }
 0x1c2   : > { %v1375_v24 = vsub.f32 %v428_v26, %v1322_v62  ;;  %v1374_v12 = vsub.f32 %v427_v3, %v1318_v20 }
 0x1c5   : > { %v1326_v22 = vpop.permute.xlu1 %1325  ;;  %v1330_v29 = vpop.permute.xlu0 %1329 }
 0x1c6   : > { %v1377_v53 = vsub.f32 %v430_v61, %v1330_v29  ;;  %v1376_v17 = vsub.f32 %v429_v11, %v1326_v22 }
 0x1c9   : > { %v1334_v30 = vpop.permute.xlu1 %1333  ;;  %v1338_v28 = vpop.permute.xlu0 %1337 }
 0x1ca   : > { %v1378_v0 = vsub.f32 %v431_v51, %v1334_v30 }
 0x1cd   : > { %v1342_v8 = vpop.permute.xlu1 %1341  ;;  %v1346_v56 = vpop.permute.xlu0 %1345 }
 0x1ce   : > { %v1380_v6 = vsub.f32 %v433_v44, %v1342_v8 }
 0x1d1   : > { %v1350_v31 = vpop.permute.xlu1 %1349  ;;  %v1354_v45 = vpop.permute.xlu0 %1353 }
 0x1d2   : > { %v1382_v4 = vsub.f32 %v435_v5, %v1350_v31 }
 0x1d5   : > { %v3429_v16 = vpop.permute.xlu1 %1357  ;;  %v3431_v50 = vpop.permute.xlu0 %1361 }
 0x1d6   : > { %v1384_v7 = vsub.f32 %v437_v35, %v3429_v16 }
 0x1d9   : > { %v3433_v33 = vpop.permute.xlu1 %1365  ;;  %v3435_v1 = vpop.permute.xlu0 %1369 }
 0x1da   : > { %v1386_v2 = vsub.f32 %v439_v32, %v3433_v33 }
 0x1dd   : > { %v2646_v52 = vpop.permute.xlu1 %2645  ;;  %v2651_v48 = vpop.permute.xlu0 %2650 }
 0x1de   : > { %v2648_v37 = vunpack.i.h.bf16 %v2646_v52  ;;  %v2647_v55 = vunpack.i.l.bf16 %v2646_v52  ;;  %v2653_v34 = vunpack.i.h.bf16 %v2651_v48  ;;  %v2652_v39 = vunpack.i.l.bf16 %v2651_v48 }
 0x1df   : > { %v1379_v52 = vsub.f32 %v432_v27, %v1338_v28 }
 0x1e0   : > { %v1453_v46 = vmul.f32 %v2648_v37, %v1373_v43  ;;  %v1452_v60 = vmul.f32 %v2647_v55, %v1372_v47  ;;  %v1455_v42 = vmul.f32 %v2653_v34, %v1375_v24  ;;  %v1454_v19 = vmul.f32 %v2652_v39, %v1374_v12 }
 0x1e1   : > { %v2656_v59 = vpop.permute.xlu1 %2655  ;;  %v2661_v54 = vpop.permute.xlu0 %2660  ;;  %v1381_v37 = vsub.f32 %v434_v21, %v1346_v56  ;;  %v1383_v39 = vsub.f32 %v436_v14, %v1354_v45 }
 0x1e2   : > { %v2256_v41 = vpack.c.bf16 %v1453_v46, %v1453_v46  ;;  %v2255_v58 = vpack.c.bf16 %v1452_v60, %v1452_v60  ;;  %v2658_v23 = vunpack.i.h.bf16 %v2656_v59  ;;  %v2657_v49 = vunpack.i.l.bf16 %v2656_v59 }
 0x1e3   : > { %v2258_v18 = vpack.c.bf16 %v1455_v42, %v1455_v42  ;;  %v2663_v26 = vunpack.i.h.bf16 %v2661_v54  ;;  %v2257_v13 = vpack.c.bf16 %v1454_v19, %v1454_v19  ;;  %v2662_v62 = vunpack.i.l.bf16 %v2661_v54 }
 0x1e4   : > { %1518 = vrot.lane.b32.xlu0 %v2256_v41, %s2774_s9  ;;  %1516 = vrot.lane.b32.xlu1 %v2255_v58, %s2774_s9  ;;  %v1457_v3 = vmul.f32 %v2658_v23, %v1377_v53  ;;  %v1456_v20 = vmul.f32 %v2657_v49, %v1376_v17  ;;  %v1385_v60 = vsub.f32 %v438_v10, %v3431_v50 }
 0x1e5   : > { %v2666_v43 = vpop.permute.xlu1 %2665  ;;  %v1459_v25 = vmul.f32 %v2663_v26, %v1379_v52  ;;  %v1458_v29 = vmul.f32 %v2662_v62, %v1378_v0  ;;  %v2671_v47 = vpop.permute.xlu0 %2670  ;;  %v1387_v59 = vsub.f32 %v440_v63, %v3435_v1 }
 0x1e6   : > { %v2260_v61 = vpack.c.bf16 %v1457_v3, %v1457_v3  ;;  %v2668_v11 = vunpack.i.h.bf16 %v2666_v43  ;;  %v2259_v22 = vpack.c.bf16 %v1456_v20, %v1456_v20  ;;  %v2667_v48 = vunpack.i.l.bf16 %v2666_v43 }
 0x1e7   : > { %v2262_v15 = vpack.c.bf16 %v1459_v25, %v1459_v25  ;;  %v2673_v27 = vunpack.i.h.bf16 %v2671_v47  ;;  %v2261_v30 = vpack.c.bf16 %v1458_v29, %v1458_v29  ;;  %v2672_v55 = vunpack.i.l.bf16 %v2671_v47 }
 0x1e8   : > { %1522 = vrot.lane.b32.xlu0 %v2258_v18, %s2774_s9  ;;  %1520 = vrot.lane.b32.xlu1 %v2257_v13, %s2774_s9  ;;  %v1461_v51 = vmul.f32 %v2668_v11, %v1381_v37  ;;  %v1460_v28 = vmul.f32 %v2667_v48, %v1380_v6 }
 0x1e9   : > { %v2676_v34 = vpop.permute.xlu1 %2675  ;;  %v1463_v44 = vmul.f32 %v2673_v27, %v1383_v39  ;;  %v1462_v56 = vmul.f32 %v2672_v55, %v1382_v4  ;;  %v2681_v46 = vpop.permute.xlu0 %2680 }
 0x1ea   : > { %v2264_v36 = vpack.c.bf16 %v1461_v51, %v1461_v51  ;;  %v2678_v21 = vunpack.i.h.bf16 %v2676_v34  ;;  %v2263_v8 = vpack.c.bf16 %v1460_v28, %v1460_v28  ;;  %v2677_v24 = vunpack.i.l.bf16 %v2676_v34 }
 0x1eb   : > { %v2266_v9 = vpack.c.bf16 %v1463_v44, %v1463_v44  ;;  %v2683_v14 = vunpack.i.h.bf16 %v2681_v46  ;;  %v2265_v31 = vpack.c.bf16 %v1462_v56, %v1462_v56  ;;  %v2682_v12 = vunpack.i.l.bf16 %v2681_v46 }
 0x1ec   : > { %1526 = vrot.lane.b32.xlu0 %v2260_v61, %s2774_s9  ;;  %1524 = vrot.lane.b32.xlu1 %v2259_v22, %s2774_s9  ;;  %v1465_v5 = vmul.f32 %v2678_v21, %v1385_v60  ;;  %v1464_v45 = vmul.f32 %v2677_v24, %v1384_v7 }
 0x1ed   : > { %v1467_v35 = vmul.f32 %v2683_v14, %v1387_v59  ;;  %v1466_v16 = vmul.f32 %v2682_v12, %v1386_v2 }
 0x1ee   : > { %v2268_v38 = vpack.c.bf16 %v1465_v5, %v1465_v5  ;;  %v2267_v10 = vpack.c.bf16 %v1464_v45, %v1464_v45 }
 0x1ef   : > { %v2270_v50 = vpack.c.bf16 %v1467_v35, %v1467_v35  ;;  %v2269_v41 = vpack.c.bf16 %v1466_v16, %v1466_v16 }
 0x1f0   : > { %1530 = vrot.lane.b32.xlu0 %v2262_v15, %s2774_s9  ;;  %1528 = vrot.lane.b32.xlu1 %v2261_v30, %s2774_s9 }
 0x1f4   : > { %1534 = vrot.lane.b32.xlu0 %v2264_v36, %s2774_s9  ;;  %1532 = vrot.lane.b32.xlu1 %v2263_v8, %s2774_s9 }
 0x1f8   : > { %1538 = vrot.lane.b32.xlu0 %v2266_v9, %s2774_s9  ;;  %1536 = vrot.lane.b32.xlu1 %v2265_v31, %s2774_s9 }
 0x1fc   : > { %1542 = vrot.lane.b32.xlu0 %v2268_v38, %s2774_s9  ;;  %1540 = vrot.lane.b32.xlu1 %v2267_v10, %s2774_s9 }
 0x200   : > { %1546 = vrot.lane.b32.xlu0 %v2270_v50, %s2774_s9  ;;  %1544 = vrot.lane.b32.xlu1 %v2269_v41, %s2774_s9 }
 0x256   : > { %v1517_v40 = vpop.permute.xlu1 %1516  ;;  %v1519_v57 = vpop.permute.xlu0 %1518 }
 0x257   : > { %1565 = vst.msk [vmem:[#allocation2] sm:$0xf] %vm1564_vm3, %v1517_v40  ;;  %1566 = vst.msk [vmem:[#allocation2 + $0x4] sm:$0xf] %vm1564_vm3, %v1519_v57 }
 0x25a   : > { %v1523_v32 = vpop.permute.xlu0 %1522  ;;  %v1521_v63 = vpop.permute.xlu1 %1520 }
 0x25b   : > { %1568 = vst.msk [vmem:[#allocation2 + $0xc] sm:$0xf] %vm1564_vm3, %v1523_v32  ;;  %1567 = vst.msk [vmem:[#allocation2 + $0x8] sm:$0xf] %vm1564_vm3, %v1521_v63 }
 0x25e   : > { %v1527_v33 = vpop.permute.xlu0 %1526  ;;  %v1525_v1 = vpop.permute.xlu1 %1524 }
 0x25f   : > { %1570 = vst.msk [vmem:[#allocation2 + $0x14] sm:$0xf] %vm1564_vm3, %v1527_v33  ;;  %1569 = vst.msk [vmem:[#allocation2 + $0x10] sm:$0xf] %vm1564_vm3, %v1525_v1 }
 0x262   : > { %v1531_v58 = vpop.permute.xlu0 %1530  ;;  %v1529_v42 = vpop.permute.xlu1 %1528 }
 0x263   : > { %1572 = vst.msk [vmem:[#allocation2 + $0x1c] sm:$0xf] %vm1564_vm3, %v1531_v58  ;;  %1571 = vst.msk [vmem:[#allocation2 + $0x18] sm:$0xf] %vm1564_vm3, %v1529_v42 }
 0x266   : > { %v1535_v19 = vpop.permute.xlu0 %1534  ;;  %v1533_v23 = vpop.permute.xlu1 %1532 }
 0x267   : > { %1574 = vst.msk [vmem:[#allocation2 + $0x24] sm:$0xf] %vm1564_vm3, %v1535_v19  ;;  %1573 = vst.msk [vmem:[#allocation2 + $0x20] sm:$0xf] %vm1564_vm3, %v1533_v23 }
 0x26a   : > { %v1539_v49 = vpop.permute.xlu0 %1538  ;;  %v1537_v54 = vpop.permute.xlu1 %1536 }
 0x26b   : > { %1576 = vst.msk [vmem:[#allocation2 + $0x2c] sm:$0xf] %vm1564_vm3, %v1539_v49  ;;  %1575 = vst.msk [vmem:[#allocation2 + $0x28] sm:$0xf] %vm1564_vm3, %v1537_v54 }
 0x26e   : > { %v1543_v53 = vpop.permute.xlu0 %1542  ;;  %v1541_v17 = vpop.permute.xlu1 %1540 }
 0x26f   : > { %1578 = vst.msk [vmem:[#allocation2 + $0x34] sm:$0xf] %vm1564_vm3, %v1543_v53  ;;  %1577 = vst.msk [vmem:[#allocation2 + $0x30] sm:$0xf] %vm1564_vm3, %v1541_v17 }
 0x272   : > { %v1547_v18 = vpop.permute.xlu0 %1546  ;;  %v1545_v3 = vpop.permute.xlu1 %1544 }
 0x273   : > { %1580 = vst.msk [vmem:[#allocation2 + $0x3c] sm:$0xf] %vm1564_vm3, %v1547_v18  ;;  %1579 = vst.msk [vmem:[#allocation2 + $0x38] sm:$0xf] %vm1564_vm3, %v1545_v3 }
 0x274 PF: > { %vm1691_vm4 = vcmask 523264   ;;  %v2686_v62 = vld [vmem:[#allocation2 + $0x28] sm:$0xff]   ;;  %v1581_v52 = vld [vmem:[%s2870_s13] sm:$0xff]  ;;  %v2688_v37 = vld [vmem:[#allocation2 + $0x18] sm:$0xff]   ;;  %s1972_s12 = sshll.u32 %s2872_s14, 4  ;;  %s2775_s25 = smov [#allocation3]   ;;  %s3647_s12 = int_to_ptr.vmem [resolvable:$true] %s1972_s12 }
 0x275   : > { %v1582_v0 = vld [vmem:[%s2870_s13 + $0x8] sm:$0xff]  ;;  %v1597_v61 = vld [vmem:[%s2870_s13 + $0x80] sm:$0xff]  ;;  %v1756_v29 = vsel %vm1691_vm4, %v2686_v62, 0  ;;  %v1750_v6 = vsel %vm1691_vm4, %v2688_v37, 0  ;;  %v2689_v15 = vld [vmem:[#allocation2 + $0x10] sm:$0xff]   ;;  %s2692_s24 = scalar_lea.vmem %s3647_s12, 4096 }
 0x276   : > { %v2685_v13 = vld [vmem:[#allocation2 + $0x30] sm:$0xff]   ;;  %v1613_v25 = vpack.c.bf16 %v1582_v0, %v1581_v52  ;;  %v1598_v11 = vld [vmem:[%s2870_s13 + $0x88] sm:$0xff]  ;;  %v2687_v48 = vld [vmem:[#allocation2 + $0x20] sm:$0xff]   ;;  %v1747_v51 = vsel %vm1691_vm4, %v2689_v15, 0  ;;  %p2693_p13 = scmp.ne.s32.totalorder %s3647_s12, %s2692_s24  ;;  %s2696_s27 = sshll.u32 %s2775_s25, 4  ;;  %s2697_s27 = int_to_ptr.vmem [resolvable:$false] %s2696_s27 }
 0x277   : > { %v1759_v43 = vsel %vm1691_vm4, %v2685_v13, 0  ;;  %v1621_v22 = vpack.c.bf16 %v1598_v11, %v1597_v61  ;;  %v1753_v47 = vsel %vm1691_vm4, %v2687_v48, 0  ;;  %v2690_v27 = vld [vmem:[#allocation2 + $0x8] sm:$0xff]   ;;  %v2691_v28 = vld [vmem:[#allocation2] sm:$0xff]   ;;  %v1583_v34 = vld [vmem:[%s2870_s13 + $0x10] sm:$0xff]  ;;  %s2698_s29 = scalar_lea.vmem %s2697_s27, 8192  ;;  %p2699_p2 = scmp.lt.s32.totalorder %s3647_s12, %s2697_s27 }
 0x278   : > { %2383 = vmatprep.mubr.msk.bf16.mxu0 %vm1691_vm4, %v1613_v25  ;;  %v1744_v30 = vsel %vm1691_vm4, %v2690_v27, 0  ;;  %v1741_v55 = vsel %vm1691_vm4, %v2691_v28, 0  ;;  %v1584_v39 = vld [vmem:[%s2870_s13 + $0x18] sm:$0xff]  ;;  %v1599_v4 = vld [vmem:[%s2870_s13 + $0x90] sm:$0xff]  ;;  %v1585_v44 = vld [vmem:[%s2870_s13 + $0x20] sm:$0xff]  ;;  %p2694_p0 = pnand %p2693_p13, %p2848_p4  ;;  %p2700_p3 = scmp.lt.s32.totalorder %s2698_s29, %s2692_s24 }
 0x279   : > { %2399 = vmatprep.mubr.msk.bf16.mxu1 %vm1691_vm4, %v1621_v22  ;;  %v1600_v36 = vld [vmem:[%s2870_s13 + $0x98] sm:$0xff]  ;;  %v1586_v21 = vld [vmem:[%s2870_s13 + $0x28] sm:$0xff]  ;;  %v1601_v8 = vld [vmem:[%s2870_s13 + $0xa0] sm:$0xff]  ;;  %v1614_v24 = vpack.c.bf16 %v1584_v39, %v1583_v34 }
 0x27a   : > { %v2684_v26 = vld [vmem:[#allocation2 + $0x38] sm:$0xff]   ;;  %v1602_v56 = vld [vmem:[%s2870_s13 + $0xa8] sm:$0xff]  ;;  %v1622_v46 = vpack.c.bf16 %v1600_v36, %v1599_v4  ;;  %v1615_v60 = vpack.c.bf16 %v1586_v21, %v1585_v44  ;;  %v1587_v9 = vld [vmem:[%s2870_s13 + $0x30] sm:$0xff]  ;;  %p2695_p1 = pneg %p2694_p0  ;;  %p2701_p5 = por %p2700_p3, %p2699_p2 }
 0x27b   : > { %2438 = vmatprep.subr.msk.bf16.mxu0 %vm1691_vm4, %v2684_v26  ;;  %2439 = vmatprep.subr.msk.bf16.mxu1 %vm1691_vm4, %v2684_v26  ;;  %v1762_v20 = vsel %vm1691_vm4, %v2684_v26, 0  ;;  %v1623_v7 = vpack.c.bf16 %v1602_v56, %v1601_v8  ;;  %v1588_v5 = vld [vmem:[%s2870_s13 + $0x38] sm:$0xff]  ;;  %v1603_v14 = vld [vmem:[%s2870_s13 + $0xb0] sm:$0xff]  ;;  %v1589_v45 = vld [vmem:[%s2870_s13 + $0x40] sm:$0xff]  ;;  %v1647_v26 = vlaneseq }
 0x27c   : > { %2368 = vmatpush3.bf16.xpose.msra.mxu0 %v1762_v20  ;;  %2423 = vmatpush3.bf16.xpose.msra.mxu1 %v1762_v20  ;;  %v1604_v31 = vld [vmem:[%s2870_s13 + $0xb8] sm:$0xff]  ;;  %v1590_v12 = vld [vmem:[%s2870_s13 + $0x48] sm:$0xff]  ;;  %v1605_v59 = vld [vmem:[%s2870_s13 + $0xc0] sm:$0xff]  ;;  %v1616_v38 = vpack.c.bf16 %v1588_v5, %v1587_v9  ;;  %p2702_p6 = pnand %p2701_p5, %p2695_p1 }
 0x27d   : > { %2440 = vmatprep.subr.msk.bf16.mxu0 %vm1691_vm4, %v2685_v13  ;;  %2441 = vmatprep.subr.msk.bf16.mxu1 %vm1691_vm4, %v2685_v13  ;;  %v1606_v2 = vld [vmem:[%s2870_s13 + $0xc8] sm:$0xff]  ;;  %v1624_v35 = vpack.c.bf16 %v1604_v31, %v1603_v14  ;;  %v1617_v10 = vpack.c.bf16 %v1590_v12, %v1589_v45  ;;  %v1591_v50 = vld [vmem:[%s2870_s13 + $0x50] sm:$0xff]  ;;  %v1592_v41 = vld [vmem:[%s2870_s13 + $0x58] sm:$0xff]  ;;  %v1648_v13 = vshrl.u32 %v1647_v26, 7 }
 0x27e   : > { %v1625_v16 = vpack.c.bf16 %v1606_v2, %v1605_v59  ;;  %v1607_v40 = vld [vmem:[%s2870_s13 + $0xd0] sm:$0xff]  ;;  %v1608_v57 = vld [vmem:[%s2870_s13 + $0xd8] sm:$0xff]  ;;  %v1593_v32 = vld [vmem:[%s2870_s13 + $0x60] sm:$0xff]  ;;  %v1618_v58 = vpack.c.bf16 %v1592_v41, %v1591_v50 }
 0x27f   : > { %v1594_v63 = vld [vmem:[%s2870_s13 + $0x68] sm:$0xff]  ;;  %v1609_v33 = vld [vmem:[%s2870_s13 + $0xe0] sm:$0xff]  ;;  %v1626_v42 = vpack.c.bf16 %v1608_v57, %v1607_v40  ;;  %v1595_v49 = vld [vmem:[%s2870_s13 + $0x70] sm:$0xff] }
 0x280   : > { %v1610_v1 = vld [vmem:[%s2870_s13 + $0xe8] sm:$0xff]  ;;  %v1619_v19 = vpack.c.bf16 %v1594_v63, %v1593_v32  ;;  %v1596_v54 = vld [vmem:[%s2870_s13 + $0x78] sm:$0xff]  ;;  %v1611_v53 = vld [vmem:[%s2870_s13 + $0xf0] sm:$0xff] }
 0x281   : > { %v1627_v23 = vpack.c.bf16 %v1610_v1, %v1609_v33  ;;  %v1612_v17 = vld [vmem:[%s2870_s13 + $0xf8] sm:$0xff]  ;;  %v1620_v18 = vpack.c.bf16 %v1596_v54, %v1595_v49  ;;  %v1645_v20 = vld [vmem:[%s3706_s4] sm:$0x1]  ;;  %s2271_s13 = sshll.u32 %s2760_s21, 12  ;;  %s3657_s21 = scalar_lea.sflag [#allocation4], %s289_s7 }
 0x282   : > { %v1628_v3 = vpack.c.bf16 %v1612_v17, %v1611_v53  ;;  %s3645_s17 = scalar_lea.hbm %s3707_s5, %s2271_s13 }
 0x284   : > { %2370 = vmatpush3.bf16.xpose.msra.mxu0 %v1759_v43  ;;  %2424 = vmatpush3.bf16.xpose.msra.mxu1 %v1759_v43  ;;  %v1649_v43 = vsub.s32 0, %v1648_v13 }
 0x285   : > { %2442 = vmatprep.subr.msk.bf16.mxu0 %vm1691_vm4, %v2686_v62  ;;  %2443 = vmatprep.subr.msk.bf16.mxu1 %vm1691_vm4, %v2686_v62  ;;  %v1646_v62 = vunpack.c.l.bf16 %v1645_v20 }
 0x287   : > { %v3580_v52 = vrot.slane %v1646_v62, %v1649_v43 }
 0x28c   : > { %2372 = vmatpush3.bf16.xpose.msra.mxu0 %v1756_v29  ;;  %2425 = vmatpush3.bf16.xpose.msra.mxu1 %v1756_v29 }
 0x28d   : > { %2444 = vmatprep.subr.msk.bf16.mxu0 %vm1691_vm4, %v2687_v48  ;;  %2445 = vmatprep.subr.msk.bf16.mxu1 %vm1691_vm4, %v2687_v48 }
 0x294   : > { %2374 = vmatpush3.bf16.xpose.msra.mxu0 %v1753_v47  ;;  %2426 = vmatpush3.bf16.xpose.msra.mxu1 %v1753_v47 }
 0x295   : > { %2446 = vmatprep.subr.msk.bf16.mxu0 %vm1691_vm4, %v2688_v37  ;;  %2447 = vmatprep.subr.msk.bf16.mxu1 %vm1691_vm4, %v2688_v37 }
 0x29c   : > { %2376 = vmatpush3.bf16.xpose.msra.mxu0 %v1750_v6  ;;  %2427 = vmatpush3.bf16.xpose.msra.mxu1 %v1750_v6 }
 0x29d   : > { %2448 = vmatprep.subr.msk.bf16.mxu0 %vm1691_vm4, %v2689_v15  ;;  %2449 = vmatprep.subr.msk.bf16.mxu1 %vm1691_vm4, %v2689_v15 }
 0x2a4   : > { %2378 = vmatpush3.bf16.xpose.msra.mxu0 %v1747_v51  ;;  %2428 = vmatpush3.bf16.xpose.msra.mxu1 %v1747_v51 }
 0x2a5   : > { %2450 = vmatprep.subr.msk.bf16.mxu0 %vm1691_vm4, %v2690_v27  ;;  %2451 = vmatprep.subr.msk.bf16.mxu1 %vm1691_vm4, %v2690_v27 }
 0x2ac   : > { %2380 = vmatpush3.bf16.xpose.msra.mxu0 %v1744_v30  ;;  %2429 = vmatpush3.bf16.xpose.msra.mxu1 %v1744_v30 }
 0x2ad   : > { %2452 = vmatprep.subr.msk.bf16.mxu0 %vm1691_vm4, %v2691_v28  ;;  %2453 = vmatprep.subr.msk.bf16.mxu1 %vm1691_vm4, %v2691_v28 }
 0x2b4   : > { %2382 = vmatpush3.bf16.xpose.msra.mxu0 %v1741_v55  ;;  %2430 = vmatpush3.bf16.xpose.msra.mxu1 %v1741_v55 }
 0x2bb   : > { %2384 = vmatmul.mubr.msk.bf16.vlgmr.msra.gmra.mxu0 %vm1691_vm4, %v1614_v24  ;;  %2400 = vmatmul.mubr.msk.bf16.vlgmr.msra.gmra.mxu1 %vm1691_vm4, %v1622_v46 }
 0x2bc   : > { %2387 = vmatprep.mubr.msk.bf16.mxu0 %vm1691_vm4, %v1615_v60  ;;  %2403 = vmatprep.mubr.msk.bf16.mxu1 %vm1691_vm4, %v1623_v7 }
 0x2c3   : > { %2388 = vmatmul.mubr.msk.bf16.gmra.mxu0 %vm1691_vm4, %v1616_v38  ;;  %2404 = vmatmul.mubr.msk.bf16.gmra.mxu1 %vm1691_vm4, %v1624_v35 }
 0x2c4   : > { %2391 = vmatprep.mubr.msk.bf16.mxu0 %vm1691_vm4, %v1617_v10  ;;  %2407 = vmatprep.mubr.msk.bf16.mxu1 %vm1691_vm4, %v1625_v16 }
 0x2cb   : > { %2392 = vmatmul.mubr.msk.bf16.gmra.mxu0 %vm1691_vm4, %v1618_v58  ;;  %2408 = vmatmul.mubr.msk.bf16.gmra.mxu1 %vm1691_vm4, %v1626_v42 }
 0x2cc   : > { %2395 = vmatprep.mubr.msk.bf16.mxu0 %vm1691_vm4, %v1619_v19  ;;  %2411 = vmatprep.mubr.msk.bf16.mxu1 %vm1691_vm4, %v1627_v23 }
 0x2d3   : > { %2396 = vmatmul.mubr.msk.bf16.gmra.mxu0 %vm1691_vm4, %v1620_v18  ;;  %2412 = vmatmul.mubr.msk.bf16.gmra.mxu1 %vm1691_vm4, %v1628_v3 }
 0x37b   : > { %v2385_v0 = vpop.f32.mrf.mxu0  ;;  %v2401_v61 = vpop.f32.mrf.mxu1 }
 0x37c   : > { %v1807_v25 = vadd.f32 %v2385_v0, %v3580_v52  ;;  %v1871_v11 = vadd.f32 %v2401_v61, %v3580_v52 }
 0x37d   : > { %v1798_v22 = vpop.f32.mrf.mxu0  ;;  %v1862_v29 = vpop.f32.mrf.mxu1 }
 0x37e   : > { %1927 = vst [vmem:[%s2872_s14 + $0x10] sm:$0xff] %v1807_v25  ;;  %1943 = vst [vmem:[%s2872_s14 + $0x90] sm:$0xff] %v1871_v11  ;;  %v1799_v48 = vadd.f32 %v1798_v22, %v3580_v52  ;;  %v1863_v47 = vadd.f32 %v1862_v29, %v3580_v52 }
 0x37f   : > { %v2386_v37 = vpop.f32.mrf.mxu0  ;;  %v2402_v6 = vpop.f32.mrf.mxu1 }
 0x380   : > { %1925 = vst [vmem:[%s2872_s14] sm:$0xff] %v1799_v48  ;;  %1941 = vst [vmem:[%s2872_s14 + $0x80] sm:$0xff] %v1863_v47  ;;  %v1810_v15 = vadd.f32 %v2386_v37, %v3580_v52  ;;  %v1874_v51 = vadd.f32 %v2402_v6, %v3580_v52 }
 0x381   : > { %v1801_v27 = vpop.f32.mrf.mxu0  ;;  %v1865_v30 = vpop.f32.mrf.mxu1 }
 0x382   : > { %1928 = vst [vmem:[%s2872_s14 + $0x18] sm:$0xff] %v1810_v15  ;;  %1944 = vst [vmem:[%s2872_s14 + $0x98] sm:$0xff] %v1874_v51  ;;  %v1802_v28 = vadd.f32 %v1801_v27, %v3580_v52  ;;  %v1866_v55 = vadd.f32 %v1865_v30, %v3580_v52 }
 0x383   : > { %v2389_v34 = vpop.f32.mrf.mxu0  ;;  %v2405_v39 = vpop.f32.mrf.mxu1 }
 0x384   : > { %1926 = vst [vmem:[%s2872_s14 + $0x8] sm:$0xff] %v1802_v28  ;;  %1942 = vst [vmem:[%s2872_s14 + $0x88] sm:$0xff] %v1866_v55  ;;  %v1823_v4 = vadd.f32 %v2389_v34, %v3580_v52  ;;  %v1887_v36 = vadd.f32 %v2405_v39, %v3580_v52 }
 0x385   : > { %v1814_v44 = vpop.f32.mrf.mxu0  ;;  %v1878_v21 = vpop.f32.mrf.mxu1 }
 0x386   : > { %1931 = vst [vmem:[%s2872_s14 + $0x30] sm:$0xff] %v1823_v4  ;;  %1947 = vst [vmem:[%s2872_s14 + $0xb0] sm:$0xff] %v1887_v36  ;;  %v1815_v8 = vadd.f32 %v1814_v44, %v3580_v52  ;;  %v1879_v56 = vadd.f32 %v1878_v21, %v3580_v52 }
 0x387   : > { %v2390_v24 = vpop.f32.mrf.mxu0  ;;  %v2406_v46 = vpop.f32.mrf.mxu1 }
 0x388   : > { %1929 = vst [vmem:[%s2872_s14 + $0x20] sm:$0xff] %v1815_v8  ;;  %1945 = vst [vmem:[%s2872_s14 + $0xa0] sm:$0xff] %v1879_v56  ;;  %v1826_v60 = vadd.f32 %v2390_v24, %v3580_v52  ;;  %v1890_v7 = vadd.f32 %v2406_v46, %v3580_v52 }
 0x389   : > { %v1817_v9 = vpop.f32.mrf.mxu0  ;;  %v1881_v5 = vpop.f32.mrf.mxu1 }
 0x38a   : > { %1932 = vst [vmem:[%s2872_s14 + $0x38] sm:$0xff] %v1826_v60  ;;  %1948 = vst [vmem:[%s2872_s14 + $0xb8] sm:$0xff] %v1890_v7  ;;  %v1818_v14 = vadd.f32 %v1817_v9, %v3580_v52  ;;  %v1882_v31 = vadd.f32 %v1881_v5, %v3580_v52 }
 0x38b   : > { %v2393_v45 = vpop.f32.mrf.mxu0  ;;  %v2409_v12 = vpop.f32.mrf.mxu1 }
 0x38c   : > { %1930 = vst [vmem:[%s2872_s14 + $0x28] sm:$0xff] %v1818_v14  ;;  %1946 = vst [vmem:[%s2872_s14 + $0xa8] sm:$0xff] %v1882_v31  ;;  %v1839_v59 = vadd.f32 %v2393_v45, %v3580_v52  ;;  %v1903_v2 = vadd.f32 %v2409_v12, %v3580_v52 }
 0x38d   : > { %v1830_v38 = vpop.f32.mrf.mxu0  ;;  %v1894_v35 = vpop.f32.mrf.mxu1 }
 0x38e   : > { %1935 = vst [vmem:[%s2872_s14 + $0x50] sm:$0xff] %v1839_v59  ;;  %1951 = vst [vmem:[%s2872_s14 + $0xd0] sm:$0xff] %v1903_v2  ;;  %v1831_v10 = vadd.f32 %v1830_v38, %v3580_v52  ;;  %v1895_v16 = vadd.f32 %v1894_v35, %v3580_v52 }
 0x38f   : > { %v2394_v50 = vpop.f32.mrf.mxu0  ;;  %v2410_v41 = vpop.f32.mrf.mxu1 }
 0x390   : > { %1933 = vst [vmem:[%s2872_s14 + $0x40] sm:$0xff] %v1831_v10  ;;  %1949 = vst [vmem:[%s2872_s14 + $0xc0] sm:$0xff] %v1895_v16  ;;  %v1842_v40 = vadd.f32 %v2394_v50, %v3580_v52  ;;  %v1906_v57 = vadd.f32 %v2410_v41, %v3580_v52 }
 0x391   : > { %v1833_v32 = vpop.f32.mrf.mxu0  ;;  %v1897_v63 = vpop.f32.mrf.mxu1 }
 0x392   : > { %1936 = vst [vmem:[%s2872_s14 + $0x58] sm:$0xff] %v1842_v40  ;;  %1952 = vst [vmem:[%s2872_s14 + $0xd8] sm:$0xff] %v1906_v57  ;;  %v1834_v33 = vadd.f32 %v1833_v32, %v3580_v52  ;;  %v1898_v1 = vadd.f32 %v1897_v63, %v3580_v52 }
 0x393   : > { %v2397_v58 = vpop.f32.mrf.mxu0  ;;  %v2413_v42 = vpop.f32.mrf.mxu1 }
 0x394   : > { %1934 = vst [vmem:[%s2872_s14 + $0x48] sm:$0xff] %v1834_v33  ;;  %1950 = vst [vmem:[%s2872_s14 + $0xc8] sm:$0xff] %v1898_v1  ;;  %v1855_v19 = vadd.f32 %v2397_v58, %v3580_v52  ;;  %v1919_v23 = vadd.f32 %v2413_v42, %v3580_v52 }
 0x395   : > { %v1846_v49 = vpop.f32.mrf.mxu0  ;;  %v1910_v54 = vpop.f32.mrf.mxu1 }
 0x396   : > { %1939 = vst [vmem:[%s2872_s14 + $0x70] sm:$0xff] %v1855_v19  ;;  %1955 = vst [vmem:[%s2872_s14 + $0xf0] sm:$0xff] %v1919_v23  ;;  %v1847_v53 = vadd.f32 %v1846_v49, %v3580_v52  ;;  %v1911_v17 = vadd.f32 %v1910_v54, %v3580_v52 }
 0x397   : > { %v2398_v18 = vpop.f32.mrf.mxu0  ;;  %v2414_v3 = vpop.f32.mrf.mxu1 }
 0x398   : > { %1937 = vst [vmem:[%s2872_s14 + $0x60] sm:$0xff] %v1847_v53  ;;  %1953 = vst [vmem:[%s2872_s14 + $0xe0] sm:$0xff] %v1911_v17  ;;  %v1858_v26 = vadd.f32 %v2398_v18, %v3580_v52  ;;  %v1922_v13 = vadd.f32 %v2414_v3, %v3580_v52 }
 0x399   : > { %v1849_v20 = vpop.f32.mrf.mxu0  ;;  %v1913_v62 = vpop.f32.mrf.mxu1 }
 0x39a   : > { %1940 = vst [vmem:[%s2872_s14 + $0x78] sm:$0xff] %v1858_v26  ;;  %1956 = vst [vmem:[%s2872_s14 + $0xf8] sm:$0xff] %v1922_v13  ;;  %v1850_v43 = vadd.f32 %v1849_v20, %v3580_v52  ;;  %v1914_v0 = vadd.f32 %v1913_v62, %v3580_v52 }
 0x39c   : > { %1938 = vst [vmem:[%s2872_s14 + $0x68] sm:$0xff] %v1850_v43  ;;  %1954 = vst [vmem:[%s2872_s14 + $0xe8] sm:$0xff] %v1914_v0 }
 0x39d   : > { %2705 = shalt.err (!%p2702_p6)
}
 0x39e   : > { %s2706_s7 = scalar_lea.hbm %s3645_s17, 4096  ;;  %s2710_s9 = scalar_lea.hbm %s3707_s5, 8192 }
 0x39f   : > { %p2707_p7 = scmp.ne.s32.totalorder %s3645_s17, %s2706_s7  ;;  %p2711_p11 = scmp.lt.s32.totalorder %s3645_s17, %s3707_s5 }
 0x3a0   : > { %p2712_p12 = scmp.lt.s32.totalorder %s2710_s9, %s2706_s7 }
 0x3a1   : > { %p2708_p9 = pnand %p2707_p7, %p2848_p4 }
 0x3a2   : > { %p2713_p13 = por %p2712_p12, %p2711_p11 }
 0x3a3   : > { %p2709_p10 = pneg %p2708_p9 }
 0x3a5   : > { %p2714_p0 = pnand %p2713_p13, %p2709_p10 }
 0x3a7   : > { %2717 = shalt.err (!%p2714_p0)
}
 0x3a8   : > { %s2776_s13 = smov 128   ;;  %s2777_s15 = smov 8  }
 0x3a9   : > { %2454 = dma.vmem_to_hbm [thread:$0]  (%p2848_p4), %s3647_s12, 4096, %s3645_s17, %s3657_s21, %s2776_s13, %s2776_s13, %s2777_s15  }
 0x3aa PF: > { %p2460_p1 = scmp.ge.s32.totalorder %s2768_s23, 2  ;;  %s1987_s16 = sand.u32 1, %s2748_s18  }
 0x3ab   : > { %s1988_s24 = scalar_lea.sflag [#allocation4], %s1987_s16 }
 0x3ac   : > { %p2457_p2 = pnand %p2460_p1, %p2855_p8 }
 0x3ae   : > { %p2458_p3 = pneg %p2457_p2 }
 0x3b0   : > { %2743 = dma.done.wait (%p2458_p3), %s1988_s24, 4096  }
 0x3b1   : > { %2745 = vsyncadd (%p2458_p3), %s1988_s24, 4294963200  ;;  %s18_s23 = sadd.s32 1, %s2768_s23   ;;  %s3788_s18 = smov %s2752_s19 }
 0x3b2   : > { %p15_p5 = scmp.ge.s32.totalorder %s18_s23, 4   ;;  %s3789_s19 = smov %s2756_s20 }
 0x3b3   : > { %s3790_s20 = smov %s2861_s6  ;;  %s3791_s21 = smov %s2764_s22 }
 0x3b4   : > { %s3792_s22 = smov %s3794_s26  ;;  %17 = sbr.rel (!%p15_p5) target bundleno = 4 (0x4), region = 91 }
 0x3b9   :  { %1993 = vsyncpa [#allocation4], 1 }
 0x3ba   :  { %1995 = vsyncpa [#allocation4 + $0x1], 1 }

</bundles_post_ra>
